<compile_context>
chip_gen: v7x
topology: tpu7x:2x2x1
jax: 0.10.0
libtpu: 0.0.40
codegen_flags: <defaults>
</compile_context>

<pallas_src>
import functools

import jax
import jax.numpy as jnp
from jax.experimental import pallas as pl
from jax.experimental.pallas import tpu as pltpu


def actor_kernel(state_ref, act_ref, h0_ref, c0_ref,
                 w1_ref, b1_ref, w2s_ref, w2a_ref, b2_ref,
                 wih_ref, whh_ref, blstm_ref,
                 w3f_ref, w3l_ref, b3_ref, w4_ref, b4_ref,
                 out_ref, hout_ref, cout_ref,
                 x_buf,
                 *, seq_len, batch, num_layers, hidden_dim, max_action):
    T, B, L, H = seq_len, batch, num_layers, hidden_dim
    f32 = jnp.float32

    s = state_ref[...]                       # (T*B, S)
    a = act_ref[...]                         # (T*B, A)

    # fc_branch = relu(linear1(state)) for all timesteps in one GEMM.
    fc_all = jnp.maximum(
        jnp.dot(s, w1_ref[...], preferred_element_type=f32) + b1_ref[...], 0.0)

    # lstm input = relu(linear2([state, last_action])): concat folded into a
    # split matmul with weights pre-split in the wrapper (no in-kernel slices).
    x_all = jnp.maximum(
        jnp.dot(s, w2s_ref[...], preferred_element_type=f32)
        + jnp.dot(a, w2a_ref[...], preferred_element_type=f32)
        + b2_ref[...], 0.0)                  # (T*B, H)

    # Stacked LSTM, cuDNN-style restructure (PyTorch gate order: i, f, g, o).
    for l in range(L):
        # Input projection for ALL timesteps in one GEMM (off the serial path);
        # b_ih + b_hh were pre-summed in the wrapper. Kept as a value — no
        # scratch store/load round trip.
        gx_all = (jnp.dot(x_all, wih_ref[l], preferred_element_type=f32)
                  + blstm_ref[l])            # (T*B, 4H)
        whh = whh_ref[l]                     # (H, 4H)
        h = h0_ref[l]                        # (B, H)
        c = c0_ref[l]                        # (B, H)
        for t in range(T):                   # serial path: h @ W_hh only
            gates = gx_all[t * B:(t + 1) * B, :] + jnp.dot(
                h, whh, preferred_element_type=f32)          # (B, 4H)
            # One full-width sigmoid + one full-width tanh per step (the EUP
            # processes the whole 128-lane vreg regardless), then slice the
            # already-activated block.
            sig = jax.nn.sigmoid(gates)
            tnh = jnp.tanh(gates)
            i_g = sig[:, 0 * H:1 * H]
            f_g = sig[:, 1 * H:2 * H]
            g_g = tnh[:, 2 * H:3 * H]
            o_g = sig[:, 3 * H:4 * H]
            c = f_g * c + i_g * g_g
            h = o_g * jnp.tanh(c)
            x_buf[t * B:(t + 1) * B, :] = h
        hout_ref[l] = h
        cout_ref[l] = c
        x_all = x_buf[...]                   # this layer's output sequence
        # TODO(synk): nn.LSTM inter-layer dropout is train-mode only; not applied (eval semantics).

    # x = relu(linear3([fc_branch, lstm_branch])) — concat folded via pre-split w3.
    y = jnp.maximum(
        jnp.dot(fc_all, w3f_ref[...], preferred_element_type=f32)
        + jnp.dot(x_all, w3l_ref[...], preferred_element_type=f32)
        + b3_ref[...], 0.0)

    # out = max_action * tanh(linear4(x)); stored once (single writeback DMA).
    out = max_action * jnp.tanh(
        jnp.dot(y, w4_ref[...], preferred_element_type=f32) + b4_ref[...])
    out_ref[...] = out.astype(out_ref.dtype)


def actor_forward(params, state, last_action, hidden_in, *, max_action):
    """state: (B, T, state_dim), last_action: (B, T, action_dim),
       hidden_in: (h0, c0) each (num_layers, B, hidden_dim)."""
    h0, c0 = hidden_in
    B, T, S = state.shape
    A = last_action.shape[-1]
    L, _, H = h0.shape

    # Time-major then flatten (T, B, F) -> (T*B, F): plain-JAX edge glue that
    # lets every feedforward stage in the kernel be a single 2-D GEMM.
    st = jnp.transpose(state, (1, 0, 2)).reshape(T * B, S).astype(jnp.float32)
    la = jnp.transpose(last_action, (1, 0, 2)).reshape(T * B, A).astype(jnp.float32)

    # Pre-transpose to (in, out) and pre-split so the kernel never slices weights.
    w1t = params["w1"].T                                  # (S, H)
    w2t = params["w2"].T                                  # (S+A, H)
    w2s, w2a = w2t[:S, :], w2t[S:, :]                     # (S, H), (A, H)
    wih = jnp.transpose(params["wih"], (0, 2, 1))         # (L, H, 4H)
    whh = jnp.transpose(params["whh"], (0, 2, 1))         # (L, H, 4H)
    b_lstm = params["bih"] + params["bhh"]                # (L, 1, 4H)
    w3t = params["w3"].T                                  # (2H, H)
    w3f, w3l = w3t[:H, :], w3t[H:, :]                     # (H, H), (H, H)
    w4t = params["w4"].T                                  # (H, A)

    kernel = functools.partial(actor_kernel, seq_len=T, batch=B, num_layers=L,
                               hidden_dim=H, max_action=float(max_action))

    out, h_n, c_n = pl.pallas_call(
        kernel,
        out_shape=(jax.ShapeDtypeStruct((T * B, A), jnp.float32),
                   jax.ShapeDtypeStruct((L, B, H), jnp.float32),
                   jax.ShapeDtypeStruct((L, B, H), jnp.float32)),
        scratch_shapes=[pltpu.VMEM((T * B, H), jnp.float32)],  # layer outputs
    )(st, la, h0.astype(jnp.float32), c0.astype(jnp.float32),
      w1t, params["b1"], w2s, w2a, params["b2"],
      wih, whh, b_lstm,
      w3f, w3l, params["b3"], w4t, params["b4"])

    out = out.reshape(T, B, A)
    return jnp.transpose(out, (1, 0, 2)), (h_n, c_n)


def actor_reference(params, state, last_action, hidden_in, *, max_action):
    """Pure-JAX reference mirroring the PyTorch forward (eval mode)."""
    h0, c0 = hidden_in
    L, B, H = h0.shape
    st = jnp.transpose(state, (1, 0, 2))
    la = jnp.transpose(last_action, (1, 0, 2))
    T = st.shape[0]

    fc = jax.nn.relu(st @ params["w1"].T + params["b1"][0])
    x = jax.nn.relu(jnp.concatenate([st, la], -1) @ params["w2"].T + params["b2"][0])

    h = [h0[l] for l in range(L)]
    c = [c0[l] for l in range(L)]
    seq = []
    for t in range(T):
        inp = x[t]
        for l in range(L):
            gates = (inp @ params["wih"][l].T + params["bih"][l][0]
                     + h[l] @ params["whh"][l].T + params["bhh"][l][0])
            i_g = jax.nn.sigmoid(gates[:, :H])
            f_g = jax.nn.sigmoid(gates[:, H:2 * H])
            g_g = jnp.tanh(gates[:, 2 * H:3 * H])
            o_g = jax.nn.sigmoid(gates[:, 3 * H:])
            c[l] = f_g * c[l] + i_g * g_g
            h[l] = o_g * jnp.tanh(c[l])
            inp = h[l]
        seq.append(inp)
    lstm_out = jnp.stack(seq, 0)
    merged = jnp.concatenate([fc, lstm_out], -1)
    y = jax.nn.relu(merged @ params["w3"].T + params["b3"][0])
    out = max_action * jnp.tanh(y @ params["w4"].T + params["b4"][0])
    return jnp.transpose(out, (1, 0, 2)), (jnp.stack(h), jnp.stack(c))


def init_params(key, state_dim, action_dim, hidden_dim, num_layers):
    """Xavier-uniform linear weights (bias=0); uniform(-1/sqrt(H), 1/sqrt(H))
       LSTM params (PyTorch defaults)."""
    keys = jax.random.split(key, 8)

    def xavier(k, out_d, in_d):
        lim = jnp.sqrt(6.0 / (in_d + out_d))
        return jax.random.uniform(k, (out_d, in_d), jnp.float32, -lim, lim)

    H = hidden_dim
    k_lstm = 1.0 / jnp.sqrt(H)
    params = {
        "w1": xavier(keys[0], H, state_dim),
        "b1": jnp.zeros((1, H), jnp.float32),
        "w2": xavier(keys[1], H, state_dim + action_dim),
        "b2": jnp.zeros((1, H), jnp.float32),
        "wih": jax.random.uniform(keys[2], (num_layers, 4 * H, H), jnp.float32,
                                  -k_lstm, k_lstm),
        "whh": jax.random.uniform(keys[3], (num_layers, 4 * H, H), jnp.float32,
                                  -k_lstm, k_lstm),
        "bih": jax.random.uniform(keys[4], (num_layers, 1, 4 * H), jnp.float32,
                                  -k_lstm, k_lstm),
        "bhh": jax.random.uniform(keys[5], (num_layers, 1, 4 * H), jnp.float32,
                                  -k_lstm, k_lstm),
        "w3": xavier(keys[6], H, 2 * H),
        "b3": jnp.zeros((1, H), jnp.float32),
        "w4": xavier(keys[7], action_dim, H),
        "b4": jnp.zeros((1, action_dim), jnp.float32),
    }
    return params


if __name__ == "__main__":
    STATE_DIM, ACTION_DIM, HIDDEN_DIM, NUM_LAYERS = 6, 3, 32, 2
    MAX_ACTION = 1.0
    BATCH, SEQ = 2, 8

    key = jax.random.PRNGKey(0)
    kp, ks, ka, kh, kc = jax.random.split(key, 5)
    params = init_params(kp, STATE_DIM, ACTION_DIM, HIDDEN_DIM, NUM_LAYERS)

    state = jax.random.normal(ks, (BATCH, SEQ, STATE_DIM), jnp.float32)
    last_action = jax.random.normal(ka, (BATCH, SEQ, ACTION_DIM), jnp.float32)
    h0 = jax.random.normal(kh, (NUM_LAYERS, BATCH, HIDDEN_DIM), jnp.float32)
    c0 = jax.random.normal(kc, (NUM_LAYERS, BATCH, HIDDEN_DIM), jnp.float32)

    x, (h_n, c_n) = actor_forward(params, state, last_action, (h0, c0),
                                  max_action=MAX_ACTION)
    jax.block_until_ready((x, h_n, c_n))

    x_ref, (h_ref, c_ref) = actor_reference(params, state, last_action, (h0, c0),
                                            max_action=MAX_ACTION)
    assert x.shape == (BATCH, SEQ, ACTION_DIM)
    assert h_n.shape == (NUM_LAYERS, BATCH, HIDDEN_DIM)
    assert c_n.shape == (NUM_LAYERS, BATCH, HIDDEN_DIM)
    assert jnp.allclose(x, x_ref, atol=1e-3, rtol=1e-3)
    assert jnp.allclose(h_n, h_ref, atol=1e-3, rtol=1e-3)
    assert jnp.allclose(c_n, c_ref, atol=1e-3, rtol=1e-3)

    print("KERNEL_OK")
</pallas_src>

<mosaic_0001>
module attributes {stable_mosaic.version = 11 : i64} {
  func.func @actor_kernel(%arg0: memref<16x6xf32, #tpu.memory_space<vmem>>, %arg1: memref<16x3xf32, #tpu.memory_space<vmem>>, %arg2: memref<2x2x32xf32, #tpu.memory_space<vmem>>, %arg3: memref<2x2x32xf32, #tpu.memory_space<vmem>>, %arg4: memref<6x32xf32, #tpu.memory_space<vmem>>, %arg5: memref<1x32xf32, #tpu.memory_space<vmem>>, %arg6: memref<6x32xf32, #tpu.memory_space<vmem>>, %arg7: memref<3x32xf32, #tpu.memory_space<vmem>>, %arg8: memref<1x32xf32, #tpu.memory_space<vmem>>, %arg9: memref<2x32x128xf32, #tpu.memory_space<vmem>>, %arg10: memref<2x32x128xf32, #tpu.memory_space<vmem>>, %arg11: memref<2x1x128xf32, #tpu.memory_space<vmem>>, %arg12: memref<32x32xf32, #tpu.memory_space<vmem>>, %arg13: memref<32x32xf32, #tpu.memory_space<vmem>>, %arg14: memref<1x32xf32, #tpu.memory_space<vmem>>, %arg15: memref<32x3xf32, #tpu.memory_space<vmem>>, %arg16: memref<1x3xf32, #tpu.memory_space<vmem>>, %arg17: memref<16x3xf32, #tpu.memory_space<vmem>>, %arg18: memref<2x2x32xf32, #tpu.memory_space<vmem>>, %arg19: memref<2x2x32xf32, #tpu.memory_space<vmem>>, %arg20: memref<16x32xf32, #tpu.memory_space<vmem>>) attributes {dimension_semantics = [], scalar_prefetch = 0 : i64, scratch_operands = 1 : i64, tpu.core_type = #tpu.core_type<tc>} {
    %c0 = arith.constant 0 : index
    %c0_0 = arith.constant 0 : index
    %0 = vector.load %arg0[%c0, %c0_0] : memref<16x6xf32, #tpu.memory_space<vmem>>, vector<16x6xf32>
    %c0_1 = arith.constant 0 : index
    %c0_2 = arith.constant 0 : index
    %1 = vector.load %arg1[%c0_1, %c0_2] : memref<16x3xf32, #tpu.memory_space<vmem>>, vector<16x3xf32>
    %c0_3 = arith.constant 0 : index
    %c0_4 = arith.constant 0 : index
    %2 = vector.load %arg4[%c0_3, %c0_4] : memref<6x32xf32, #tpu.memory_space<vmem>>, vector<6x32xf32>
    %cst = arith.constant dense<0.000000e+00> : vector<16x32xf32>
    %3 = tpu.matmul %0, %2, %cst {dimension_numbers = #tpu.dot_dimension_numbers<[1], [0], [0], [1], [0, 0, 1, 1], [], []>} : vector<16x6xf32>, vector<6x32xf32>, vector<16x32xf32> -> vector<16x32xf32>
    %c0_5 = arith.constant 0 : index
    %c0_6 = arith.constant 0 : index
    %4 = vector.load %arg5[%c0_5, %c0_6] : memref<1x32xf32, #tpu.memory_space<vmem>>, vector<1x32xf32>
    %5 = vector.broadcast %4 : vector<1x32xf32> to vector<16x32xf32>
    %6 = arith.addf %3, %5 : vector<16x32xf32>
    %cst_7 = arith.constant 0.000000e+00 : f32
    %7 = vector.broadcast %cst_7 : f32 to vector<16x32xf32>
    %8 = arith.maximumf %6, %7 : vector<16x32xf32>
    %c0_8 = arith.constant 0 : index
    %c0_9 = arith.constant 0 : index
    %9 = vector.load %arg6[%c0_8, %c0_9] : memref<6x32xf32, #tpu.memory_space<vmem>>, vector<6x32xf32>
    %cst_10 = arith.constant dense<0.000000e+00> : vector<16x32xf32>
    %10 = tpu.matmul %0, %9, %cst_10 {dimension_numbers = #tpu.dot_dimension_numbers<[1], [0], [0], [1], [0, 0, 1, 1], [], []>} : vector<16x6xf32>, vector<6x32xf32>, vector<16x32xf32> -> vector<16x32xf32>
    %c0_11 = arith.constant 0 : index
    %c0_12 = arith.constant 0 : index
    %11 = vector.load %arg7[%c0_11, %c0_12] : memref<3x32xf32, #tpu.memory_space<vmem>>, vector<3x32xf32>
    %cst_13 = arith.constant dense<0.000000e+00> : vector<16x32xf32>
    %12 = tpu.matmul %1, %11, %cst_13 {dimension_numbers = #tpu.dot_dimension_numbers<[1], [0], [0], [1], [0, 0, 1, 1], [], []>} : vector<16x3xf32>, vector<3x32xf32>, vector<16x32xf32> -> vector<16x32xf32>
    %13 = arith.addf %10, %12 : vector<16x32xf32>
    %c0_14 = arith.constant 0 : index
    %c0_15 = arith.constant 0 : index
    %14 = vector.load %arg8[%c0_14, %c0_15] : memref<1x32xf32, #tpu.memory_space<vmem>>, vector<1x32xf32>
    %15 = vector.broadcast %14 : vector<1x32xf32> to vector<16x32xf32>
    %16 = arith.addf %13, %15 : vector<16x32xf32>
    %cst_16 = arith.constant 0.000000e+00 : f32
    %17 = vector.broadcast %cst_16 : f32 to vector<16x32xf32>
    %18 = arith.maximumf %16, %17 : vector<16x32xf32>
    %c0_17 = arith.constant 0 : index
    %c0_18 = arith.constant 0 : index
    %c0_19 = arith.constant 0 : index
    %19 = vector.load %arg9[%c0_17, %c0_18, %c0_19] : memref<2x32x128xf32, #tpu.memory_space<vmem>>, vector<1x32x128xf32>
    %20 = vector.shape_cast %19 : vector<1x32x128xf32> to vector<32x128xf32>
    %cst_20 = arith.constant dense<0.000000e+00> : vector<16x128xf32>
    %21 = tpu.matmul %18, %20, %cst_20 {dimension_numbers = #tpu.dot_dimension_numbers<[1], [0], [0], [1], [0, 0, 1, 1], [], []>} : vector<16x32xf32>, vector<32x128xf32>, vector<16x128xf32> -> vector<16x128xf32>
    %c0_21 = arith.constant 0 : index
    %c0_22 = arith.constant 0 : index
    %c0_23 = arith.constant 0 : index
    %22 = vector.load %arg11[%c0_21, %c0_22, %c0_23] : memref<2x1x128xf32, #tpu.memory_space<vmem>>, vector<1x1x128xf32>
    %23 = vector.shape_cast %22 : vector<1x1x128xf32> to vector<1x128xf32>
    %24 = vector.broadcast %23 : vector<1x128xf32> to vector<16x128xf32>
    %25 = arith.addf %21, %24 : vector<16x128xf32>
    %c0_24 = arith.constant 0 : index
    %c0_25 = arith.constant 0 : index
    %c0_26 = arith.constant 0 : index
    %26 = vector.load %arg10[%c0_24, %c0_25, %c0_26] : memref<2x32x128xf32, #tpu.memory_space<vmem>>, vector<1x32x128xf32>
    %27 = vector.shape_cast %26 : vector<1x32x128xf32> to vector<32x128xf32>
    %c0_27 = arith.constant 0 : index
    %c0_28 = arith.constant 0 : index
    %c0_29 = arith.constant 0 : index
    %28 = vector.load %arg2[%c0_27, %c0_28, %c0_29] : memref<2x2x32xf32, #tpu.memory_space<vmem>>, vector<1x2x32xf32>
    %29 = vector.shape_cast %28 : vector<1x2x32xf32> to vector<2x32xf32>
    %c0_30 = arith.constant 0 : index
    %c0_31 = arith.constant 0 : index
    %c0_32 = arith.constant 0 : index
    %30 = vector.load %arg3[%c0_30, %c0_31, %c0_32] : memref<2x2x32xf32, #tpu.memory_space<vmem>>, vector<1x2x32xf32>
    %31 = vector.shape_cast %30 : vector<1x2x32xf32> to vector<2x32xf32>
    %32 = vector.extract_strided_slice %25 {offsets = [0, 0], sizes = [2, 128], strides = [1, 1]} : vector<16x128xf32> to vector<2x128xf32>
    %cst_33 = arith.constant dense<0.000000e+00> : vector<2x128xf32>
    %33 = tpu.matmul %29, %27, %cst_33 {dimension_numbers = #tpu.dot_dimension_numbers<[1], [0], [0], [1], [0, 0, 1, 1], [], []>} : vector<2x32xf32>, vector<32x128xf32>, vector<2x128xf32> -> vector<2x128xf32>
    %34 = arith.addf %32, %33 : vector<2x128xf32>
    %35 = arith.negf %34 : vector<2x128xf32>
    %36 = math.exp %35 : vector<2x128xf32>
    %cst_34 = arith.constant 1.000000e+00 : f32
    %37 = vector.broadcast %cst_34 : f32 to vector<2x128xf32>
    %38 = arith.addf %37, %36 : vector<2x128xf32>
    %39 = arith.divf %37, %38 : vector<2x128xf32>
    %40 = math.tanh %34 : vector<2x128xf32>
    %41 = vector.extract_strided_slice %39 {offsets = [0, 0], sizes = [2, 32], strides = [1, 1]} : vector<2x128xf32> to vector<2x32xf32>
    %42 = vector.extract_strided_slice %39 {offsets = [0, 32], sizes = [2, 32], strides = [1, 1]} : vector<2x128xf32> to vector<2x32xf32>
    %43 = vector.extract_strided_slice %40 {offsets = [0, 64], sizes = [2, 32], strides = [1, 1]} : vector<2x128xf32> to vector<2x32xf32>
    %44 = vector.extract_strided_slice %39 {offsets = [0, 96], sizes = [2, 32], strides = [1, 1]} : vector<2x128xf32> to vector<2x32xf32>
    %45 = arith.mulf %42, %31 : vector<2x32xf32>
    %46 = arith.mulf %41, %43 : vector<2x32xf32>
    %47 = arith.addf %45, %46 : vector<2x32xf32>
    %48 = math.tanh %47 : vector<2x32xf32>
    %49 = arith.mulf %44, %48 : vector<2x32xf32>
    %c0_35 = arith.constant 0 : index
    %c0_36 = arith.constant 0 : index
    %50 = vector.load %arg20[%c0_35, %c0_36] : memref<16x32xf32, #tpu.memory_space<vmem>>, vector<2x32xf32>
    tpu.vector_store %arg20[%c0_35, %c0_36], %49 {strides = array<i32>} : memref<16x32xf32, #tpu.memory_space<vmem>>, vector<2x32xf32>,
    %51 = vector.extract_strided_slice %25 {offsets = [2, 0], sizes = [2, 128], strides = [1, 1]} : vector<16x128xf32> to vector<2x128xf32>
    %cst_37 = arith.constant dense<0.000000e+00> : vector<2x128xf32>
    %52 = tpu.matmul %49, %27, %cst_37 {dimension_numbers = #tpu.dot_dimension_numbers<[1], [0], [0], [1], [0, 0, 1, 1], [], []>} : vector<2x32xf32>, vector<32x128xf32>, vector<2x128xf32> -> vector<2x128xf32>
    %53 = arith.addf %51, %52 : vector<2x128xf32>
    %54 = arith.negf %53 : vector<2x128xf32>
    %55 = math.exp %54 : vector<2x128xf32>
    %cst_38 = arith.constant 1.000000e+00 : f32
    %56 = vector.broadcast %cst_38 : f32 to vector<2x128xf32>
    %57 = arith.addf %56, %55 : vector<2x128xf32>
    %58 = arith.divf %56, %57 : vector<2x128xf32>
    %59 = math.tanh %53 : vector<2x128xf32>
    %60 = vector.extract_strided_slice %58 {offsets = [0, 0], sizes = [2, 32], strides = [1, 1]} : vector<2x128xf32> to vector<2x32xf32>
    %61 = vector.extract_strided_slice %58 {offsets = [0, 32], sizes = [2, 32], strides = [1, 1]} : vector<2x128xf32> to vector<2x32xf32>
    %62 = vector.extract_strided_slice %59 {offsets = [0, 64], sizes = [2, 32], strides = [1, 1]} : vector<2x128xf32> to vector<2x32xf32>
    %63 = vector.extract_strided_slice %58 {offsets = [0, 96], sizes = [2, 32], strides = [1, 1]} : vector<2x128xf32> to vector<2x32xf32>
    %64 = arith.mulf %61, %47 : vector<2x32xf32>
    %65 = arith.mulf %60, %62 : vector<2x32xf32>
    %66 = arith.addf %64, %65 : vector<2x32xf32>
    %67 = math.tanh %66 : vector<2x32xf32>
    %68 = arith.mulf %63, %67 : vector<2x32xf32>
    %c2 = arith.constant 2 : index
    %c0_39 = arith.constant 0 : index
    %69 = vector.load %arg20[%c2, %c0_39] : memref<16x32xf32, #tpu.memory_space<vmem>>, vector<2x32xf32>
    tpu.vector_store %arg20[%c2, %c0_39], %68 {strides = array<i32>} : memref<16x32xf32, #tpu.memory_space<vmem>>, vector<2x32xf32>,
    %70 = vector.extract_strided_slice %25 {offsets = [4, 0], sizes = [2, 128], strides = [1, 1]} : vector<16x128xf32> to vector<2x128xf32>
    %cst_40 = arith.constant dense<0.000000e+00> : vector<2x128xf32>
    %71 = tpu.matmul %68, %27, %cst_40 {dimension_numbers = #tpu.dot_dimension_numbers<[1], [0], [0], [1], [0, 0, 1, 1], [], []>} : vector<2x32xf32>, vector<32x128xf32>, vector<2x128xf32> -> vector<2x128xf32>
    %72 = arith.addf %70, %71 : vector<2x128xf32>
    %73 = arith.negf %72 : vector<2x128xf32>
    %74 = math.exp %73 : vector<2x128xf32>
    %cst_41 = arith.constant 1.000000e+00 : f32
    %75 = vector.broadcast %cst_41 : f32 to vector<2x128xf32>
    %76 = arith.addf %75, %74 : vector<2x128xf32>
    %77 = arith.divf %75, %76 : vector<2x128xf32>
    %78 = math.tanh %72 : vector<2x128xf32>
    %79 = vector.extract_strided_slice %77 {offsets = [0, 0], sizes = [2, 32], strides = [1, 1]} : vector<2x128xf32> to vector<2x32xf32>
    %80 = vector.extract_strided_slice %77 {offsets = [0, 32], sizes = [2, 32], strides = [1, 1]} : vector<2x128xf32> to vector<2x32xf32>
    %81 = vector.extract_strided_slice %78 {offsets = [0, 64], sizes = [2, 32], strides = [1, 1]} : vector<2x128xf32> to vector<2x32xf32>
    %82 = vector.extract_strided_slice %77 {offsets = [0, 96], sizes = [2, 32], strides = [1, 1]} : vector<2x128xf32> to vector<2x32xf32>
    %83 = arith.mulf %80, %66 : vector<2x32xf32>
    %84 = arith.mulf %79, %81 : vector<2x32xf32>
    %85 = arith.addf %83, %84 : vector<2x32xf32>
    %86 = math.tanh %85 : vector<2x32xf32>
    %87 = arith.mulf %82, %86 : vector<2x32xf32>
    %c4 = arith.constant 4 : index
    %c0_42 = arith.constant 0 : index
    %88 = vector.load %arg20[%c4, %c0_42] : memref<16x32xf32, #tpu.memory_space<vmem>>, vector<2x32xf32>
    tpu.vector_store %arg20[%c4, %c0_42], %87 {strides = array<i32>} : memref<16x32xf32, #tpu.memory_space<vmem>>, vector<2x32xf32>,
    %89 = vector.extract_strided_slice %25 {offsets = [6, 0], sizes = [2, 128], strides = [1, 1]} : vector<16x128xf32> to vector<2x128xf32>
    %cst_43 = arith.constant dense<0.000000e+00> : vector<2x128xf32>
    %90 = tpu.matmul %87, %27, %cst_43 {dimension_numbers = #tpu.dot_dimension_numbers<[1], [0], [0], [1], [0, 0, 1, 1], [], []>} : vector<2x32xf32>, vector<32x128xf32>, vector<2x128xf32> -> vector<2x128xf32>
    %91 = arith.addf %89, %90 : vector<2x128xf32>
    %92 = arith.negf %91 : vector<2x128xf32>
    %93 = math.exp %92 : vector<2x128xf32>
    %cst_44 = arith.constant 1.000000e+00 : f32
    %94 = vector.broadcast %cst_44 : f32 to vector<2x128xf32>
    %95 = arith.addf %94, %93 : vector<2x128xf32>
    %96 = arith.divf %94, %95 : vector<2x128xf32>
    %97 = math.tanh %91 : vector<2x128xf32>
    %98 = vector.extract_strided_slice %96 {offsets = [0, 0], sizes = [2, 32], strides = [1, 1]} : vector<2x128xf32> to vector<2x32xf32>
    %99 = vector.extract_strided_slice %96 {offsets = [0, 32], sizes = [2, 32], strides = [1, 1]} : vector<2x128xf32> to vector<2x32xf32>
    %100 = vector.extract_strided_slice %97 {offsets = [0, 64], sizes = [2, 32], strides = [1, 1]} : vector<2x128xf32> to vector<2x32xf32>
    %101 = vector.extract_strided_slice %96 {offsets = [0, 96], sizes = [2, 32], strides = [1, 1]} : vector<2x128xf32> to vector<2x32xf32>
    %102 = arith.mulf %99, %85 : vector<2x32xf32>
    %103 = arith.mulf %98, %100 : vector<2x32xf32>
    %104 = arith.addf %102, %103 : vector<2x32xf32>
    %105 = math.tanh %104 : vector<2x32xf32>
    %106 = arith.mulf %101, %105 : vector<2x32xf32>
    %c6 = arith.constant 6 : index
    %c0_45 = arith.constant 0 : index
    %107 = vector.load %arg20[%c6, %c0_45] : memref<16x32xf32, #tpu.memory_space<vmem>>, vector<2x32xf32>
    tpu.vector_store %arg20[%c6, %c0_45], %106 {strides = array<i32>} : memref<16x32xf32, #tpu.memory_space<vmem>>, vector<2x32xf32>,
    %108 = vector.extract_strided_slice %25 {offsets = [8, 0], sizes = [2, 128], strides = [1, 1]} : vector<16x128xf32> to vector<2x128xf32>
    %cst_46 = arith.constant dense<0.000000e+00> : vector<2x128xf32>
    %109 = tpu.matmul %106, %27, %cst_46 {dimension_numbers = #tpu.dot_dimension_numbers<[1], [0], [0], [1], [0, 0, 1, 1], [], []>} : vector<2x32xf32>, vector<32x128xf32>, vector<2x128xf32> -> vector<2x128xf32>
    %110 = arith.addf %108, %109 : vector<2x128xf32>
    %111 = arith.negf %110 : vector<2x128xf32>
    %112 = math.exp %111 : vector<2x128xf32>
    %cst_47 = arith.constant 1.000000e+00 : f32
    %113 = vector.broadcast %cst_47 : f32 to vector<2x128xf32>
    %114 = arith.addf %113, %112 : vector<2x128xf32>
    %115 = arith.divf %113, %114 : vector<2x128xf32>
    %116 = math.tanh %110 : vector<2x128xf32>
    %117 = vector.extract_strided_slice %115 {offsets = [0, 0], sizes = [2, 32], strides = [1, 1]} : vector<2x128xf32> to vector<2x32xf32>
    %118 = vector.extract_strided_slice %115 {offsets = [0, 32], sizes = [2, 32], strides = [1, 1]} : vector<2x128xf32> to vector<2x32xf32>
    %119 = vector.extract_strided_slice %116 {offsets = [0, 64], sizes = [2, 32], strides = [1, 1]} : vector<2x128xf32> to vector<2x32xf32>
    %120 = vector.extract_strided_slice %115 {offsets = [0, 96], sizes = [2, 32], strides = [1, 1]} : vector<2x128xf32> to vector<2x32xf32>
    %121 = arith.mulf %118, %104 : vector<2x32xf32>
    %122 = arith.mulf %117, %119 : vector<2x32xf32>
    %123 = arith.addf %121, %122 : vector<2x32xf32>
    %124 = math.tanh %123 : vector<2x32xf32>
    %125 = arith.mulf %120, %124 : vector<2x32xf32>
    %c8 = arith.constant 8 : index
    %c0_48 = arith.constant 0 : index
    %126 = vector.load %arg20[%c8, %c0_48] : memref<16x32xf32, #tpu.memory_space<vmem>>, vector<2x32xf32>
    tpu.vector_store %arg20[%c8, %c0_48], %125 {strides = array<i32>} : memref<16x32xf32, #tpu.memory_space<vmem>>, vector<2x32xf32>,
    %127 = vector.extract_strided_slice %25 {offsets = [10, 0], sizes = [2, 128], strides = [1, 1]} : vector<16x128xf32> to vector<2x128xf32>
    %cst_49 = arith.constant dense<0.000000e+00> : vector<2x128xf32>
    %128 = tpu.matmul %125, %27, %cst_49 {dimension_numbers = #tpu.dot_dimension_numbers<[1], [0], [0], [1], [0, 0, 1, 1], [], []>} : vector<2x32xf32>, vector<32x128xf32>, vector<2x128xf32> -> vector<2x128xf32>
    %129 = arith.addf %127, %128 : vector<2x128xf32>
    %130 = arith.negf %129 : vector<2x128xf32>
    %131 = math.exp %130 : vector<2x128xf32>
    %cst_50 = arith.constant 1.000000e+00 : f32
    %132 = vector.broadcast %cst_50 : f32 to vector<2x128xf32>
    %133 = arith.addf %132, %131 : vector<2x128xf32>
    %134 = arith.divf %132, %133 : vector<2x128xf32>
    %135 = math.tanh %129 : vector<2x128xf32>
    %136 = vector.extract_strided_slice %134 {offsets = [0, 0], sizes = [2, 32], strides = [1, 1]} : vector<2x128xf32> to vector<2x32xf32>
    %137 = vector.extract_strided_slice %134 {offsets = [0, 32], sizes = [2, 32], strides = [1, 1]} : vector<2x128xf32> to vector<2x32xf32>
    %138 = vector.extract_strided_slice %135 {offsets = [0, 64], sizes = [2, 32], strides = [1, 1]} : vector<2x128xf32> to vector<2x32xf32>
    %139 = vector.extract_strided_slice %134 {offsets = [0, 96], sizes = [2, 32], strides = [1, 1]} : vector<2x128xf32> to vector<2x32xf32>
    %140 = arith.mulf %137, %123 : vector<2x32xf32>
    %141 = arith.mulf %136, %138 : vector<2x32xf32>
    %142 = arith.addf %140, %141 : vector<2x32xf32>
    %143 = math.tanh %142 : vector<2x32xf32>
    %144 = arith.mulf %139, %143 : vector<2x32xf32>
    %c10 = arith.constant 10 : index
    %c0_51 = arith.constant 0 : index
    %145 = vector.load %arg20[%c10, %c0_51] : memref<16x32xf32, #tpu.memory_space<vmem>>, vector<2x32xf32>
    tpu.vector_store %arg20[%c10, %c0_51], %144 {strides = array<i32>} : memref<16x32xf32, #tpu.memory_space<vmem>>, vector<2x32xf32>,
    %146 = vector.extract_strided_slice %25 {offsets = [12, 0], sizes = [2, 128], strides = [1, 1]} : vector<16x128xf32> to vector<2x128xf32>
    %cst_52 = arith.constant dense<0.000000e+00> : vector<2x128xf32>
    %147 = tpu.matmul %144, %27, %cst_52 {dimension_numbers = #tpu.dot_dimension_numbers<[1], [0], [0], [1], [0, 0, 1, 1], [], []>} : vector<2x32xf32>, vector<32x128xf32>, vector<2x128xf32> -> vector<2x128xf32>
    %148 = arith.addf %146, %147 : vector<2x128xf32>
    %149 = arith.negf %148 : vector<2x128xf32>
    %150 = math.exp %149 : vector<2x128xf32>
    %cst_53 = arith.constant 1.000000e+00 : f32
    %151 = vector.broadcast %cst_53 : f32 to vector<2x128xf32>
    %152 = arith.addf %151, %150 : vector<2x128xf32>
    %153 = arith.divf %151, %152 : vector<2x128xf32>
    %154 = math.tanh %148 : vector<2x128xf32>
    %155 = vector.extract_strided_slice %153 {offsets = [0, 0], sizes = [2, 32], strides = [1, 1]} : vector<2x128xf32> to vector<2x32xf32>
    %156 = vector.extract_strided_slice %153 {offsets = [0, 32], sizes = [2, 32], strides = [1, 1]} : vector<2x128xf32> to vector<2x32xf32>
    %157 = vector.extract_strided_slice %154 {offsets = [0, 64], sizes = [2, 32], strides = [1, 1]} : vector<2x128xf32> to vector<2x32xf32>
    %158 = vector.extract_strided_slice %153 {offsets = [0, 96], sizes = [2, 32], strides = [1, 1]} : vector<2x128xf32> to vector<2x32xf32>
    %159 = arith.mulf %156, %142 : vector<2x32xf32>
    %160 = arith.mulf %155, %157 : vector<2x32xf32>
    %161 = arith.addf %159, %160 : vector<2x32xf32>
    %162 = math.tanh %161 : vector<2x32xf32>
    %163 = arith.mulf %158, %162 : vector<2x32xf32>
    %c12 = arith.constant 12 : index
    %c0_54 = arith.constant 0 : index
    %164 = vector.load %arg20[%c12, %c0_54] : memref<16x32xf32, #tpu.memory_space<vmem>>, vector<2x32xf32>
    tpu.vector_store %arg20[%c12, %c0_54], %163 {strides = array<i32>} : memref<16x32xf32, #tpu.memory_space<vmem>>, vector<2x32xf32>,
    %165 = vector.extract_strided_slice %25 {offsets = [14, 0], sizes = [2, 128], strides = [1, 1]} : vector<16x128xf32> to vector<2x128xf32>
    %cst_55 = arith.constant dense<0.000000e+00> : vector<2x128xf32>
    %166 = tpu.matmul %163, %27, %cst_55 {dimension_numbers = #tpu.dot_dimension_numbers<[1], [0], [0], [1], [0, 0, 1, 1], [], []>} : vector<2x32xf32>, vector<32x128xf32>, vector<2x128xf32> -> vector<2x128xf32>
    %167 = arith.addf %165, %166 : vector<2x128xf32>
    %168 = arith.negf %167 : vector<2x128xf32>
    %169 = math.exp %168 : vector<2x128xf32>
    %cst_56 = arith.constant 1.000000e+00 : f32
    %170 = vector.broadcast %cst_56 : f32 to vector<2x128xf32>
    %171 = arith.addf %170, %169 : vector<2x128xf32>
    %172 = arith.divf %170, %171 : vector<2x128xf32>
    %173 = math.tanh %167 : vector<2x128xf32>
    %174 = vector.extract_strided_slice %172 {offsets = [0, 0], sizes = [2, 32], strides = [1, 1]} : vector<2x128xf32> to vector<2x32xf32>
    %175 = vector.extract_strided_slice %172 {offsets = [0, 32], sizes = [2, 32], strides = [1, 1]} : vector<2x128xf32> to vector<2x32xf32>
    %176 = vector.extract_strided_slice %173 {offsets = [0, 64], sizes = [2, 32], strides = [1, 1]} : vector<2x128xf32> to vector<2x32xf32>
    %177 = vector.extract_strided_slice %172 {offsets = [0, 96], sizes = [2, 32], strides = [1, 1]} : vector<2x128xf32> to vector<2x32xf32>
    %178 = arith.mulf %175, %161 : vector<2x32xf32>
    %179 = arith.mulf %174, %176 : vector<2x32xf32>
    %180 = arith.addf %178, %179 : vector<2x32xf32>
    %181 = math.tanh %180 : vector<2x32xf32>
    %182 = arith.mulf %177, %181 : vector<2x32xf32>
    %c14 = arith.constant 14 : index
    %c0_57 = arith.constant 0 : index
    %183 = vector.load %arg20[%c14, %c0_57] : memref<16x32xf32, #tpu.memory_space<vmem>>, vector<2x32xf32>
    tpu.vector_store %arg20[%c14, %c0_57], %182 {strides = array<i32>} : memref<16x32xf32, #tpu.memory_space<vmem>>, vector<2x32xf32>,
    %c0_58 = arith.constant 0 : index
    %c0_59 = arith.constant 0 : index
    %c0_60 = arith.constant 0 : index
    %184 = vector.load %arg18[%c0_58, %c0_59, %c0_60] : memref<2x2x32xf32, #tpu.memory_space<vmem>>, vector<1x2x32xf32>
    %185 = vector.shape_cast %184 : vector<1x2x32xf32> to vector<2x32xf32>
    %186 = vector.shape_cast %182 : vector<2x32xf32> to vector<1x2x32xf32>
    tpu.vector_store %arg18[%c0_58, %c0_59, %c0_60], %186 {strides = array<i32>} : memref<2x2x32xf32, #tpu.memory_space<vmem>>, vector<1x2x32xf32>,
    %c0_61 = arith.constant 0 : index
    %c0_62 = arith.constant 0 : index
    %c0_63 = arith.constant 0 : index
    %187 = vector.load %arg19[%c0_61, %c0_62, %c0_63] : memref<2x2x32xf32, #tpu.memory_space<vmem>>, vector<1x2x32xf32>
    %188 = vector.shape_cast %187 : vector<1x2x32xf32> to vector<2x32xf32>
    %189 = vector.shape_cast %180 : vector<2x32xf32> to vector<1x2x32xf32>
    tpu.vector_store %arg19[%c0_61, %c0_62, %c0_63], %189 {strides = array<i32>} : memref<2x2x32xf32, #tpu.memory_space<vmem>>, vector<1x2x32xf32>,
    %c0_64 = arith.constant 0 : index
    %c0_65 = arith.constant 0 : index
    %190 = vector.load %arg20[%c0_64, %c0_65] : memref<16x32xf32, #tpu.memory_space<vmem>>, vector<16x32xf32>
    %c1 = arith.constant 1 : index
    %c0_66 = arith.constant 0 : index
    %c0_67 = arith.constant 0 : index
    %191 = vector.load %arg9[%c1, %c0_66, %c0_67] : memref<2x32x128xf32, #tpu.memory_space<vmem>>, vector<1x32x128xf32>
    %192 = vector.shape_cast %191 : vector<1x32x128xf32> to vector<32x128xf32>
    %cst_68 = arith.constant dense<0.000000e+00> : vector<16x128xf32>
    %193 = tpu.matmul %190, %192, %cst_68 {dimension_numbers = #tpu.dot_dimension_numbers<[1], [0], [0], [1], [0, 0, 1, 1], [], []>} : vector<16x32xf32>, vector<32x128xf32>, vector<16x128xf32> -> vector<16x128xf32>
    %c1_69 = arith.constant 1 : index
    %c0_70 = arith.constant 0 : index
    %c0_71 = arith.constant 0 : index
    %194 = vector.load %arg11[%c1_69, %c0_70, %c0_71] : memref<2x1x128xf32, #tpu.memory_space<vmem>>, vector<1x1x128xf32>
    %195 = vector.shape_cast %194 : vector<1x1x128xf32> to vector<1x128xf32>
    %196 = vector.broadcast %195 : vector<1x128xf32> to vector<16x128xf32>
    %197 = arith.addf %193, %196 : vector<16x128xf32>
    %c1_72 = arith.constant 1 : index
    %c0_73 = arith.constant 0 : index
    %c0_74 = arith.constant 0 : index
    %198 = vector.load %arg10[%c1_72, %c0_73, %c0_74] : memref<2x32x128xf32, #tpu.memory_space<vmem>>, vector<1x32x128xf32>
    %199 = vector.shape_cast %198 : vector<1x32x128xf32> to vector<32x128xf32>
    %c1_75 = arith.constant 1 : index
    %c0_76 = arith.constant 0 : index
    %c0_77 = arith.constant 0 : index
    %200 = vector.load %arg2[%c1_75, %c0_76, %c0_77] : memref<2x2x32xf32, #tpu.memory_space<vmem>>, vector<1x2x32xf32>
    %201 = vector.shape_cast %200 : vector<1x2x32xf32> to vector<2x32xf32>
    %c1_78 = arith.constant 1 : index
    %c0_79 = arith.constant 0 : index
    %c0_80 = arith.constant 0 : index
    %202 = vector.load %arg3[%c1_78, %c0_79, %c0_80] : memref<2x2x32xf32, #tpu.memory_space<vmem>>, vector<1x2x32xf32>
    %203 = vector.shape_cast %202 : vector<1x2x32xf32> to vector<2x32xf32>
    %204 = vector.extract_strided_slice %197 {offsets = [0, 0], sizes = [2, 128], strides = [1, 1]} : vector<16x128xf32> to vector<2x128xf32>
    %cst_81 = arith.constant dense<0.000000e+00> : vector<2x128xf32>
    %205 = tpu.matmul %201, %199, %cst_81 {dimension_numbers = #tpu.dot_dimension_numbers<[1], [0], [0], [1], [0, 0, 1, 1], [], []>} : vector<2x32xf32>, vector<32x128xf32>, vector<2x128xf32> -> vector<2x128xf32>
    %206 = arith.addf %204, %205 : vector<2x128xf32>
    %207 = arith.negf %206 : vector<2x128xf32>
    %208 = math.exp %207 : vector<2x128xf32>
    %cst_82 = arith.constant 1.000000e+00 : f32
    %209 = vector.broadcast %cst_82 : f32 to vector<2x128xf32>
    %210 = arith.addf %209, %208 : vector<2x128xf32>
    %211 = arith.divf %209, %210 : vector<2x128xf32>
    %212 = math.tanh %206 : vector<2x128xf32>
    %213 = vector.extract_strided_slice %211 {offsets = [0, 0], sizes = [2, 32], strides = [1, 1]} : vector<2x128xf32> to vector<2x32xf32>
    %214 = vector.extract_strided_slice %211 {offsets = [0, 32], sizes = [2, 32], strides = [1, 1]} : vector<2x128xf32> to vector<2x32xf32>
    %215 = vector.extract_strided_slice %212 {offsets = [0, 64], sizes = [2, 32], strides = [1, 1]} : vector<2x128xf32> to vector<2x32xf32>
    %216 = vector.extract_strided_slice %211 {offsets = [0, 96], sizes = [2, 32], strides = [1, 1]} : vector<2x128xf32> to vector<2x32xf32>
    %217 = arith.mulf %214, %203 : vector<2x32xf32>
    %218 = arith.mulf %213, %215 : vector<2x32xf32>
    %219 = arith.addf %217, %218 : vector<2x32xf32>
    %220 = math.tanh %219 : vector<2x32xf32>
    %221 = arith.mulf %216, %220 : vector<2x32xf32>
    %c0_83 = arith.constant 0 : index
    %c0_84 = arith.constant 0 : index
    %222 = vector.load %arg20[%c0_83, %c0_84] : memref<16x32xf32, #tpu.memory_space<vmem>>, vector<2x32xf32>
    tpu.vector_store %arg20[%c0_83, %c0_84], %221 {strides = array<i32>} : memref<16x32xf32, #tpu.memory_space<vmem>>, vector<2x32xf32>,
    %223 = vector.extract_strided_slice %197 {offsets = [2, 0], sizes = [2, 128], strides = [1, 1]} : vector<16x128xf32> to vector<2x128xf32>
    %cst_85 = arith.constant dense<0.000000e+00> : vector<2x128xf32>
    %224 = tpu.matmul %221, %199, %cst_85 {dimension_numbers = #tpu.dot_dimension_numbers<[1], [0], [0], [1], [0, 0, 1, 1], [], []>} : vector<2x32xf32>, vector<32x128xf32>, vector<2x128xf32> -> vector<2x128xf32>
    %225 = arith.addf %223, %224 : vector<2x128xf32>
    %226 = arith.negf %225 : vector<2x128xf32>
    %227 = math.exp %226 : vector<2x128xf32>
    %cst_86 = arith.constant 1.000000e+00 : f32
    %228 = vector.broadcast %cst_86 : f32 to vector<2x128xf32>
    %229 = arith.addf %228, %227 : vector<2x128xf32>
    %230 = arith.divf %228, %229 : vector<2x128xf32>
    %231 = math.tanh %225 : vector<2x128xf32>
    %232 = vector.extract_strided_slice %230 {offsets = [0, 0], sizes = [2, 32], strides = [1, 1]} : vector<2x128xf32> to vector<2x32xf32>
    %233 = vector.extract_strided_slice %230 {offsets = [0, 32], sizes = [2, 32], strides = [1, 1]} : vector<2x128xf32> to vector<2x32xf32>
    %234 = vector.extract_strided_slice %231 {offsets = [0, 64], sizes = [2, 32], strides = [1, 1]} : vector<2x128xf32> to vector<2x32xf32>
    %235 = vector.extract_strided_slice %230 {offsets = [0, 96], sizes = [2, 32], strides = [1, 1]} : vector<2x128xf32> to vector<2x32xf32>
    %236 = arith.mulf %233, %219 : vector<2x32xf32>
    %237 = arith.mulf %232, %234 : vector<2x32xf32>
    %238 = arith.addf %236, %237 : vector<2x32xf32>
    %239 = math.tanh %238 : vector<2x32xf32>
    %240 = arith.mulf %235, %239 : vector<2x32xf32>
    %c2_87 = arith.constant 2 : index
    %c0_88 = arith.constant 0 : index
    %241 = vector.load %arg20[%c2_87, %c0_88] : memref<16x32xf32, #tpu.memory_space<vmem>>, vector<2x32xf32>
    tpu.vector_store %arg20[%c2_87, %c0_88], %240 {strides = array<i32>} : memref<16x32xf32, #tpu.memory_space<vmem>>, vector<2x32xf32>,
    %242 = vector.extract_strided_slice %197 {offsets = [4, 0], sizes = [2, 128], strides = [1, 1]} : vector<16x128xf32> to vector<2x128xf32>
    %cst_89 = arith.constant dense<0.000000e+00> : vector<2x128xf32>
    %243 = tpu.matmul %240, %199, %cst_89 {dimension_numbers = #tpu.dot_dimension_numbers<[1], [0], [0], [1], [0, 0, 1, 1], [], []>} : vector<2x32xf32>, vector<32x128xf32>, vector<2x128xf32> -> vector<2x128xf32>
    %244 = arith.addf %242, %243 : vector<2x128xf32>
    %245 = arith.negf %244 : vector<2x128xf32>
    %246 = math.exp %245 : vector<2x128xf32>
    %cst_90 = arith.constant 1.000000e+00 : f32
    %247 = vector.broadcast %cst_90 : f32 to vector<2x128xf32>
    %248 = arith.addf %247, %246 : vector<2x128xf32>
    %249 = arith.divf %247, %248 : vector<2x128xf32>
    %250 = math.tanh %244 : vector<2x128xf32>
    %251 = vector.extract_strided_slice %249 {offsets = [0, 0], sizes = [2, 32], strides = [1, 1]} : vector<2x128xf32> to vector<2x32xf32>
    %252 = vector.extract_strided_slice %249 {offsets = [0, 32], sizes = [2, 32], strides = [1, 1]} : vector<2x128xf32> to vector<2x32xf32>
    %253 = vector.extract_strided_slice %250 {offsets = [0, 64], sizes = [2, 32], strides = [1, 1]} : vector<2x128xf32> to vector<2x32xf32>
    %254 = vector.extract_strided_slice %249 {offsets = [0, 96], sizes = [2, 32], strides = [1, 1]} : vector<2x128xf32> to vector<2x32xf32>
    %255 = arith.mulf %252, %238 : vector<2x32xf32>
    %256 = arith.mulf %251, %253 : vector<2x32xf32>
    %257 = arith.addf %255, %256 : vector<2x32xf32>
    %258 = math.tanh %257 : vector<2x32xf32>
    %259 = arith.mulf %254, %258 : vector<2x32xf32>
    %c4_91 = arith.constant 4 : index
    %c0_92 = arith.constant 0 : index
    %260 = vector.load %arg20[%c4_91, %c0_92] : memref<16x32xf32, #tpu.memory_space<vmem>>, vector<2x32xf32>
    tpu.vector_store %arg20[%c4_91, %c0_92], %259 {strides = array<i32>} : memref<16x32xf32, #tpu.memory_space<vmem>>, vector<2x32xf32>,
    %261 = vector.extract_strided_slice %197 {offsets = [6, 0], sizes = [2, 128], strides = [1, 1]} : vector<16x128xf32> to vector<2x128xf32>
    %cst_93 = arith.constant dense<0.000000e+00> : vector<2x128xf32>
    %262 = tpu.matmul %259, %199, %cst_93 {dimension_numbers = #tpu.dot_dimension_numbers<[1], [0], [0], [1], [0, 0, 1, 1], [], []>} : vector<2x32xf32>, vector<32x128xf32>, vector<2x128xf32> -> vector<2x128xf32>
    %263 = arith.addf %261, %262 : vector<2x128xf32>
    %264 = arith.negf %263 : vector<2x128xf32>
    %265 = math.exp %264 : vector<2x128xf32>
    %cst_94 = arith.constant 1.000000e+00 : f32
    %266 = vector.broadcast %cst_94 : f32 to vector<2x128xf32>
    %267 = arith.addf %266, %265 : vector<2x128xf32>
    %268 = arith.divf %266, %267 : vector<2x128xf32>
    %269 = math.tanh %263 : vector<2x128xf32>
    %270 = vector.extract_strided_slice %268 {offsets = [0, 0], sizes = [2, 32], strides = [1, 1]} : vector<2x128xf32> to vector<2x32xf32>
    %271 = vector.extract_strided_slice %268 {offsets = [0, 32], sizes = [2, 32], strides = [1, 1]} : vector<2x128xf32> to vector<2x32xf32>
    %272 = vector.extract_strided_slice %269 {offsets = [0, 64], sizes = [2, 32], strides = [1, 1]} : vector<2x128xf32> to vector<2x32xf32>
    %273 = vector.extract_strided_slice %268 {offsets = [0, 96], sizes = [2, 32], strides = [1, 1]} : vector<2x128xf32> to vector<2x32xf32>
    %274 = arith.mulf %271, %257 : vector<2x32xf32>
    %275 = arith.mulf %270, %272 : vector<2x32xf32>
    %276 = arith.addf %274, %275 : vector<2x32xf32>
    %277 = math.tanh %276 : vector<2x32xf32>
    %278 = arith.mulf %273, %277 : vector<2x32xf32>
    %c6_95 = arith.constant 6 : index
    %c0_96 = arith.constant 0 : index
    %279 = vector.load %arg20[%c6_95, %c0_96] : memref<16x32xf32, #tpu.memory_space<vmem>>, vector<2x32xf32>
    tpu.vector_store %arg20[%c6_95, %c0_96], %278 {strides = array<i32>} : memref<16x32xf32, #tpu.memory_space<vmem>>, vector<2x32xf32>,
    %280 = vector.extract_strided_slice %197 {offsets = [8, 0], sizes = [2, 128], strides = [1, 1]} : vector<16x128xf32> to vector<2x128xf32>
    %cst_97 = arith.constant dense<0.000000e+00> : vector<2x128xf32>
    %281 = tpu.matmul %278, %199, %cst_97 {dimension_numbers = #tpu.dot_dimension_numbers<[1], [0], [0], [1], [0, 0, 1, 1], [], []>} : vector<2x32xf32>, vector<32x128xf32>, vector<2x128xf32> -> vector<2x128xf32>
    %282 = arith.addf %280, %281 : vector<2x128xf32>
    %283 = arith.negf %282 : vector<2x128xf32>
    %284 = math.exp %283 : vector<2x128xf32>
    %cst_98 = arith.constant 1.000000e+00 : f32
    %285 = vector.broadcast %cst_98 : f32 to vector<2x128xf32>
    %286 = arith.addf %285, %284 : vector<2x128xf32>
    %287 = arith.divf %285, %286 : vector<2x128xf32>
    %288 = math.tanh %282 : vector<2x128xf32>
    %289 = vector.extract_strided_slice %287 {offsets = [0, 0], sizes = [2, 32], strides = [1, 1]} : vector<2x128xf32> to vector<2x32xf32>
    %290 = vector.extract_strided_slice %287 {offsets = [0, 32], sizes = [2, 32], strides = [1, 1]} : vector<2x128xf32> to vector<2x32xf32>
    %291 = vector.extract_strided_slice %288 {offsets = [0, 64], sizes = [2, 32], strides = [1, 1]} : vector<2x128xf32> to vector<2x32xf32>
    %292 = vector.extract_strided_slice %287 {offsets = [0, 96], sizes = [2, 32], strides = [1, 1]} : vector<2x128xf32> to vector<2x32xf32>
    %293 = arith.mulf %290, %276 : vector<2x32xf32>
    %294 = arith.mulf %289, %291 : vector<2x32xf32>
    %295 = arith.addf %293, %294 : vector<2x32xf32>
    %296 = math.tanh %295 : vector<2x32xf32>
    %297 = arith.mulf %292, %296 : vector<2x32xf32>
    %c8_99 = arith.constant 8 : index
    %c0_100 = arith.constant 0 : index
    %298 = vector.load %arg20[%c8_99, %c0_100] : memref<16x32xf32, #tpu.memory_space<vmem>>, vector<2x32xf32>
    tpu.vector_store %arg20[%c8_99, %c0_100], %297 {strides = array<i32>} : memref<16x32xf32, #tpu.memory_space<vmem>>, vector<2x32xf32>,
    %299 = vector.extract_strided_slice %197 {offsets = [10, 0], sizes = [2, 128], strides = [1, 1]} : vector<16x128xf32> to vector<2x128xf32>
    %cst_101 = arith.constant dense<0.000000e+00> : vector<2x128xf32>
    %300 = tpu.matmul %297, %199, %cst_101 {dimension_numbers = #tpu.dot_dimension_numbers<[1], [0], [0], [1], [0, 0, 1, 1], [], []>} : vector<2x32xf32>, vector<32x128xf32>, vector<2x128xf32> -> vector<2x128xf32>
    %301 = arith.addf %299, %300 : vector<2x128xf32>
    %302 = arith.negf %301 : vector<2x128xf32>
    %303 = math.exp %302 : vector<2x128xf32>
    %cst_102 = arith.constant 1.000000e+00 : f32
    %304 = vector.broadcast %cst_102 : f32 to vector<2x128xf32>
    %305 = arith.addf %304, %303 : vector<2x128xf32>
    %306 = arith.divf %304, %305 : vector<2x128xf32>
    %307 = math.tanh %301 : vector<2x128xf32>
    %308 = vector.extract_strided_slice %306 {offsets = [0, 0], sizes = [2, 32], strides = [1, 1]} : vector<2x128xf32> to vector<2x32xf32>
    %309 = vector.extract_strided_slice %306 {offsets = [0, 32], sizes = [2, 32], strides = [1, 1]} : vector<2x128xf32> to vector<2x32xf32>
    %310 = vector.extract_strided_slice %307 {offsets = [0, 64], sizes = [2, 32], strides = [1, 1]} : vector<2x128xf32> to vector<2x32xf32>
    %311 = vector.extract_strided_slice %306 {offsets = [0, 96], sizes = [2, 32], strides = [1, 1]} : vector<2x128xf32> to vector<2x32xf32>
    %312 = arith.mulf %309, %295 : vector<2x32xf32>
    %313 = arith.mulf %308, %310 : vector<2x32xf32>
    %314 = arith.addf %312, %313 : vector<2x32xf32>
    %315 = math.tanh %314 : vector<2x32xf32>
    %316 = arith.mulf %311, %315 : vector<2x32xf32>
    %c10_103 = arith.constant 10 : index
    %c0_104 = arith.constant 0 : index
    %317 = vector.load %arg20[%c10_103, %c0_104] : memref<16x32xf32, #tpu.memory_space<vmem>>, vector<2x32xf32>
    tpu.vector_store %arg20[%c10_103, %c0_104], %316 {strides = array<i32>} : memref<16x32xf32, #tpu.memory_space<vmem>>, vector<2x32xf32>,
    %318 = vector.extract_strided_slice %197 {offsets = [12, 0], sizes = [2, 128], strides = [1, 1]} : vector<16x128xf32> to vector<2x128xf32>
    %cst_105 = arith.constant dense<0.000000e+00> : vector<2x128xf32>
    %319 = tpu.matmul %316, %199, %cst_105 {dimension_numbers = #tpu.dot_dimension_numbers<[1], [0], [0], [1], [0, 0, 1, 1], [], []>} : vector<2x32xf32>, vector<32x128xf32>, vector<2x128xf32> -> vector<2x128xf32>
    %320 = arith.addf %318, %319 : vector<2x128xf32>
    %321 = arith.negf %320 : vector<2x128xf32>
    %322 = math.exp %321 : vector<2x128xf32>
    %cst_106 = arith.constant 1.000000e+00 : f32
    %323 = vector.broadcast %cst_106 : f32 to vector<2x128xf32>
    %324 = arith.addf %323, %322 : vector<2x128xf32>
    %325 = arith.divf %323, %324 : vector<2x128xf32>
    %326 = math.tanh %320 : vector<2x128xf32>
    %327 = vector.extract_strided_slice %325 {offsets = [0, 0], sizes = [2, 32], strides = [1, 1]} : vector<2x128xf32> to vector<2x32xf32>
    %328 = vector.extract_strided_slice %325 {offsets = [0, 32], sizes = [2, 32], strides = [1, 1]} : vector<2x128xf32> to vector<2x32xf32>
    %329 = vector.extract_strided_slice %326 {offsets = [0, 64], sizes = [2, 32], strides = [1, 1]} : vector<2x128xf32> to vector<2x32xf32>
    %330 = vector.extract_strided_slice %325 {offsets = [0, 96], sizes = [2, 32], strides = [1, 1]} : vector<2x128xf32> to vector<2x32xf32>
    %331 = arith.mulf %328, %314 : vector<2x32xf32>
    %332 = arith.mulf %327, %329 : vector<2x32xf32>
    %333 = arith.addf %331, %332 : vector<2x32xf32>
    %334 = math.tanh %333 : vector<2x32xf32>
    %335 = arith.mulf %330, %334 : vector<2x32xf32>
    %c12_107 = arith.constant 12 : index
    %c0_108 = arith.constant 0 : index
    %336 = vector.load %arg20[%c12_107, %c0_108] : memref<16x32xf32, #tpu.memory_space<vmem>>, vector<2x32xf32>
    tpu.vector_store %arg20[%c12_107, %c0_108], %335 {strides = array<i32>} : memref<16x32xf32, #tpu.memory_space<vmem>>, vector<2x32xf32>,
    %337 = vector.extract_strided_slice %197 {offsets = [14, 0], sizes = [2, 128], strides = [1, 1]} : vector<16x128xf32> to vector<2x128xf32>
    %cst_109 = arith.constant dense<0.000000e+00> : vector<2x128xf32>
    %338 = tpu.matmul %335, %199, %cst_109 {dimension_numbers = #tpu.dot_dimension_numbers<[1], [0], [0], [1], [0, 0, 1, 1], [], []>} : vector<2x32xf32>, vector<32x128xf32>, vector<2x128xf32> -> vector<2x128xf32>
    %339 = arith.addf %337, %338 : vector<2x128xf32>
    %340 = arith.negf %339 : vector<2x128xf32>
    %341 = math.exp %340 : vector<2x128xf32>
    %cst_110 = arith.constant 1.000000e+00 : f32
    %342 = vector.broadcast %cst_110 : f32 to vector<2x128xf32>
    %343 = arith.addf %342, %341 : vector<2x128xf32>
    %344 = arith.divf %342, %343 : vector<2x128xf32>
    %345 = math.tanh %339 : vector<2x128xf32>
    %346 = vector.extract_strided_slice %344 {offsets = [0, 0], sizes = [2, 32], strides = [1, 1]} : vector<2x128xf32> to vector<2x32xf32>
    %347 = vector.extract_strided_slice %344 {offsets = [0, 32], sizes = [2, 32], strides = [1, 1]} : vector<2x128xf32> to vector<2x32xf32>
    %348 = vector.extract_strided_slice %345 {offsets = [0, 64], sizes = [2, 32], strides = [1, 1]} : vector<2x128xf32> to vector<2x32xf32>
    %349 = vector.extract_strided_slice %344 {offsets = [0, 96], sizes = [2, 32], strides = [1, 1]} : vector<2x128xf32> to vector<2x32xf32>
    %350 = arith.mulf %347, %333 : vector<2x32xf32>
    %351 = arith.mulf %346, %348 : vector<2x32xf32>
    %352 = arith.addf %350, %351 : vector<2x32xf32>
    %353 = math.tanh %352 : vector<2x32xf32>
    %354 = arith.mulf %349, %353 : vector<2x32xf32>
    %c14_111 = arith.constant 14 : index
    %c0_112 = arith.constant 0 : index
    %355 = vector.load %arg20[%c14_111, %c0_112] : memref<16x32xf32, #tpu.memory_space<vmem>>, vector<2x32xf32>
    tpu.vector_store %arg20[%c14_111, %c0_112], %354 {strides = array<i32>} : memref<16x32xf32, #tpu.memory_space<vmem>>, vector<2x32xf32>,
    %c1_113 = arith.constant 1 : index
    %c0_114 = arith.constant 0 : index
    %c0_115 = arith.constant 0 : index
    %356 = vector.load %arg18[%c1_113, %c0_114, %c0_115] : memref<2x2x32xf32, #tpu.memory_space<vmem>>, vector<1x2x32xf32>
    %357 = vector.shape_cast %356 : vector<1x2x32xf32> to vector<2x32xf32>
    %358 = vector.shape_cast %354 : vector<2x32xf32> to vector<1x2x32xf32>
    tpu.vector_store %arg18[%c1_113, %c0_114, %c0_115], %358 {strides = array<i32>} : memref<2x2x32xf32, #tpu.memory_space<vmem>>, vector<1x2x32xf32>,
    %c1_116 = arith.constant 1 : index
    %c0_117 = arith.constant 0 : index
    %c0_118 = arith.constant 0 : index
    %359 = vector.load %arg19[%c1_116, %c0_117, %c0_118] : memref<2x2x32xf32, #tpu.memory_space<vmem>>, vector<1x2x32xf32>
    %360 = vector.shape_cast %359 : vector<1x2x32xf32> to vector<2x32xf32>
    %361 = vector.shape_cast %352 : vector<2x32xf32> to vector<1x2x32xf32>
    tpu.vector_store %arg19[%c1_116, %c0_117, %c0_118], %361 {strides = array<i32>} : memref<2x2x32xf32, #tpu.memory_space<vmem>>, vector<1x2x32xf32>,
    %c0_119 = arith.constant 0 : index
    %c0_120 = arith.constant 0 : index
    %362 = vector.load %arg20[%c0_119, %c0_120] : memref<16x32xf32, #tpu.memory_space<vmem>>, vector<16x32xf32>
    %c0_121 = arith.constant 0 : index
    %c0_122 = arith.constant 0 : index
    %363 = vector.load %arg12[%c0_121, %c0_122] : memref<32x32xf32, #tpu.memory_space<vmem>>, vector<32x32xf32>
    %cst_123 = arith.constant dense<0.000000e+00> : vector<16x32xf32>
    %364 = tpu.matmul %8, %363, %cst_123 {dimension_numbers = #tpu.dot_dimension_numbers<[1], [0], [0], [1], [0, 0, 1, 1], [], []>} : vector<16x32xf32>, vector<32x32xf32>, vector<16x32xf32> -> vector<16x32xf32>
    %c0_124 = arith.constant 0 : index
    %c0_125 = arith.constant 0 : index
    %365 = vector.load %arg13[%c0_124, %c0_125] : memref<32x32xf32, #tpu.memory_space<vmem>>, vector<32x32xf32>
    %cst_126 = arith.constant dense<0.000000e+00> : vector<16x32xf32>
    %366 = tpu.matmul %362, %365, %cst_126 {dimension_numbers = #tpu.dot_dimension_numbers<[1], [0], [0], [1], [0, 0, 1, 1], [], []>} : vector<16x32xf32>, vector<32x32xf32>, vector<16x32xf32> -> vector<16x32xf32>
    %367 = arith.addf %364, %366 : vector<16x32xf32>
    %c0_127 = arith.constant 0 : index
    %c0_128 = arith.constant 0 : index
    %368 = vector.load %arg14[%c0_127, %c0_128] : memref<1x32xf32, #tpu.memory_space<vmem>>, vector<1x32xf32>
    %369 = vector.broadcast %368 : vector<1x32xf32> to vector<16x32xf32>
    %370 = arith.addf %367, %369 : vector<16x32xf32>
    %cst_129 = arith.constant 0.000000e+00 : f32
    %371 = vector.broadcast %cst_129 : f32 to vector<16x32xf32>
    %372 = arith.maximumf %370, %371 : vector<16x32xf32>
    %c0_130 = arith.constant 0 : index
    %c0_131 = arith.constant 0 : index
    %373 = vector.load %arg15[%c0_130, %c0_131] : memref<32x3xf32, #tpu.memory_space<vmem>>, vector<32x3xf32>
    %cst_132 = arith.constant dense<0.000000e+00> : vector<16x3xf32>
    %374 = tpu.matmul %372, %373, %cst_132 {dimension_numbers = #tpu.dot_dimension_numbers<[1], [0], [0], [1], [0, 0, 1, 1], [], []>} : vector<16x32xf32>, vector<32x3xf32>, vector<16x3xf32> -> vector<16x3xf32>
    %c0_133 = arith.constant 0 : index
    %c0_134 = arith.constant 0 : index
    %375 = vector.load %arg16[%c0_133, %c0_134] : memref<1x3xf32, #tpu.memory_space<vmem>>, vector<1x3xf32>
    %376 = vector.broadcast %375 : vector<1x3xf32> to vector<16x3xf32>
    %377 = arith.addf %374, %376 : vector<16x3xf32>
    %378 = math.tanh %377 : vector<16x3xf32>
    %cst_135 = arith.constant 1.000000e+00 : f32
    %379 = vector.broadcast %cst_135 : f32 to vector<16x3xf32>
    %380 = arith.mulf %379, %378 : vector<16x3xf32>
    %c0_136 = arith.constant 0 : index
    %c0_137 = arith.constant 0 : index
    %381 = vector.load %arg17[%c0_136, %c0_137] : memref<16x3xf32, #tpu.memory_space<vmem>>, vector<16x3xf32>
    tpu.vector_store %arg17[%c0_136, %c0_137], %380 {strides = array<i32>} : memref<16x3xf32, #tpu.memory_space<vmem>>, vector<16x3xf32>,
    return
  }
}

</mosaic_0001>

<bundles_post_ra>
// kernel: tpu_custom_call.1
= control target key start
LH: loop header
LB: loop body
LE: loop exit
PB: predicated region body
PF: predicated region fallthrough
CT: control target
= control target key end

     0   :  { %s4444_s0 = inlined_call_operand.vmem [shape: f32[16,6], index: 0, kind: input, shape index: {}]   ;;  %s4445_s1 = inlined_call_operand.vmem [shape: f32[16,3], index: 1, kind: input, shape index: {}]   ;;  %s4446_s2 = inlined_call_operand.hbm [shape: f32[2,2,32], index: 2, kind: input, shape index: {}]   ;;  %s4447_s3 = inlined_call_operand.hbm [shape: f32[2,2,32], index: 3, kind: input, shape index: {}]   ;;  %s4448_s4 = inlined_call_operand.hbm [shape: f32[6,32], index: 4, kind: input, shape index: {}]   ;;  %s4449_s5 = inlined_call_operand.hbm [shape: f32[1,32], index: 5, kind: input, shape index: {}]   ;;  %s4450_s6 = inlined_call_operand.hbm [shape: f32[6,32], index: 6, kind: input, shape index: {}]   ;;  %s4451_s7 = inlined_call_operand.hbm [shape: f32[3,32], index: 7, kind: input, shape index: {}]   ;;  %s4452_s8 = inlined_call_operand.hbm [shape: f32[1,32], index: 8, kind: input, shape index: {}]   ;;  %s4453_s9 = inlined_call_operand.vmem [shape: f32[2,32,128], index: 9, kind: input, shape index: {}]   ;;  %s4454_s10 = inlined_call_operand.hbm [shape: f32[2,32,128], index: 10, kind: input, shape index: {}]   ;;  %s4455_s11 = inlined_call_operand.hbm [shape: f32[2,1,128], index: 11, kind: input, shape index: {}]   ;;  %s4456_s12 = inlined_call_operand.vmem [shape: f32[32,32], index: 12, kind: input, shape index: {}]   ;;  %s4457_s13 = inlined_call_operand.vmem [shape: f32[32,32], index: 13, kind: input, shape index: {}]   ;;  %s4458_s14 = inlined_call_operand.hbm [shape: f32[1,32], index: 14, kind: input, shape index: {}]   ;;  %s4459_s15 = inlined_call_operand.vmem [shape: f32[32,3], index: 15, kind: input, shape index: {}]   ;;  %s4460_s16 = inlined_call_operand.vmem [shape: f32[1,3], index: 16, kind: input, shape index: {}]   ;;  %s4461_s17 = inlined_call_operand.vmem [shape: f32[16,3], index: 17, kind: output, shape index: {0}]   ;;  %s4462_s18 = inlined_call_operand.hbm [shape: f32[2,2,32], index: 18, kind: output, shape index: {1}]   ;;  %s4463_s19 = inlined_call_operand.hbm [shape: f32[2,2,32], index: 19, kind: output, shape index: {2}]  }
   0x1   :  { %4472 = sst [smem:[#allocation31_spill]] %s4444_s0 }
   0x2   :  { %4473 = sst [smem:[#allocation32_spill]] %s4445_s1 }
   0x3   :  { %4474 = sst [smem:[#allocation33_spill]] %s4446_s2 }
   0x4   :  { %4475 = sst [smem:[#allocation34_spill]] %s4447_s3 }
   0x5   :  { %25 = vsyncpa [#allocation4], 0 }
   0x6   :  { %26 = vsyncpa [#allocation7], 0 }
   0x7   :  { %27 = vsyncpa [#allocation10], 0 }
   0x8   :  { %28 = vsyncpa [#allocation13], 0 }
   0x9   :  { %29 = vsyncpa [#allocation16], 0 }
   0xa   :  { %30 = vsyncpa [#allocation19], 0 }
   0xb   :  { %31 = vsyncpa [#allocation5], 0 }
   0xc   :  { %32 = vsyncpa [#allocation22], 0  ;;  %s3756_s0 = smov [#allocation6]   ;;  %s3757_s20 = smov [#allocation9]  }
   0xd   :  { %s54_s30 = sshll.u32 %s3756_s0, 4  ;;  %s77_s21 = sshll.u32 %s3757_s20, 4  ;;  %s55_s30 = int_to_ptr.vmem [resolvable:$true] %s54_s30  ;;  %s3879_s21 = int_to_ptr.vmem [resolvable:$true] %s77_s21 }
   0xe   :  { %s4476_s2 = sld [smem:[#allocation34_spill]] }
  0x14   :  { %s3476_s23 = scalar_lea.hbm %s4476_s2, 64 }
  0x15   :  { %p3477_p0 = scmp.ne.s32.totalorder %s4476_s2, %s3476_s23  ;;  %p3480_p1 = scmp.lt.u32.totalorder %s3476_s23, %s4476_s2 }
  0x17   :  { %p3482_p2 = pnand %p3480_p1, %p3477_p0 }
  0x19   :  { %3485 = shalt.err (!%p3482_p2)
}
  0x1a   :  { %s3486_s27 = scalar_lea.vmem %s55_s30, 64  ;;  %p3491_p4 = scmp.lt.s32.totalorder %s55_s30, %s55_s30 }
  0x1b   :  { %p3487_p3 = scmp.ne.s32.totalorder %s55_s30, %s3486_s27  ;;  %p3492_p5 = scmp.lt.s32.totalorder %s3486_s27, %s3486_s27 }
  0x1d   :  { %p3493_p6 = por %p3492_p5, %p3491_p4 }
  0x1f   :  { %p3494_p7 = pnand %p3493_p6, %p3487_p3 }
  0x21   :  { %3497 = shalt.err (!%p3494_p7)
}
  0x22   :  { %s4468_s28 = smov 32   ;;  %s4470_s29 = smov 2  }
  0x23   :  { %60 = dma.hbm_to_vmem [thread:$0]  %s4476_s2, 64, %s55_s30, [#allocation7], %s4468_s28, %s4468_s28, %s4470_s29  }
  0x24   :  { %s3498_s23 = scalar_lea.hbm %s4449_s5, 16 }
  0x25   :  { %p3499_p8 = scmp.ne.s32.totalorder %s4449_s5, %s3498_s23  ;;  %p3502_p9 = scmp.lt.u32.totalorder %s3498_s23, %s4449_s5 }
  0x27   :  { %p3504_p10 = pnand %p3502_p9, %p3499_p8 }
  0x29   :  { %3507 = shalt.err (!%p3504_p10)
}
  0x2a   :  { %s3508_s27 = scalar_lea.vmem %s3879_s21, 16  ;;  %s3512_s30 = scalar_lea.vmem %s3879_s21, 32 }
  0x2b   :  { %p3509_p11 = scmp.ne.s32.totalorder %s3879_s21, %s3508_s27  ;;  %p3513_p12 = scmp.lt.s32.totalorder %s3879_s21, %s3879_s21 }
  0x2c   :  { %p3514_p13 = scmp.lt.s32.totalorder %s3512_s30, %s3508_s27 }
  0x2e   :  { %p3515_p0 = por %p3514_p13, %p3513_p12 }
  0x30   :  { %p3516_p1 = pnand %p3515_p0, %p3509_p11 }
  0x32   :  { %3519 = shalt.err (!%p3516_p1)
}
  0x33   :  { %80 = dma.hbm_to_vmem [thread:$0]  %s4449_s5, 16, %s3879_s21, [#allocation10]  }
  0x34   :  { %s3760_s20 = smov [#allocation12]   ;;  %s3761_s22 = smov [#allocation15]  }
  0x35   :  { %s97_s1 = sshll.u32 %s3760_s20, 4  ;;  %s118_s23 = sshll.u32 %s3761_s22, 4  ;;  %s98_s1 = int_to_ptr.vmem [resolvable:$true] %s97_s1  ;;  %s3914_s23 = int_to_ptr.vmem [resolvable:$true] %s118_s23 }
  0x36   :  { %s3520_s3 = scalar_lea.hbm %s4451_s7, 64 }
  0x37   :  { %p3521_p2 = scmp.ne.s32.totalorder %s4451_s7, %s3520_s3  ;;  %p3524_p3 = scmp.lt.u32.totalorder %s3520_s3, %s4451_s7 }
  0x39   :  { %p3526_p4 = pnand %p3524_p3, %p3521_p2 }
  0x3b   :  { %3529 = shalt.err (!%p3526_p4)
}
  0x3c   :  { %s3530_s5 = scalar_lea.vmem %s98_s1, 64  ;;  %p3535_p6 = scmp.lt.s32.totalorder %s98_s1, %s98_s1 }
  0x3d   :  { %p3531_p5 = scmp.ne.s32.totalorder %s98_s1, %s3530_s5  ;;  %p3536_p7 = scmp.lt.s32.totalorder %s3530_s5, %s3530_s5 }
  0x3f   :  { %p3537_p8 = por %p3536_p7, %p3535_p6 }
  0x41   :  { %p3538_p9 = pnand %p3537_p8, %p3531_p5 }
  0x43   :  { %3541 = shalt.err (!%p3538_p9)
}
  0x44   :  { %100 = dma.hbm_to_vmem [thread:$0]  %s4451_s7, 64, %s98_s1, [#allocation13]  }
  0x45   :  { %s3542_s22 = scalar_lea.hbm %s4454_s10, 1024 }
  0x46   :  { %p3543_p10 = scmp.ne.s32.totalorder %s4454_s10, %s3542_s22  ;;  %p3546_p11 = scmp.lt.u32.totalorder %s3542_s22, %s4454_s10 }
  0x48   :  { %p3548_p12 = pnand %p3546_p11, %p3543_p10 }
  0x4a   :  { %3551 = shalt.err (!%p3548_p12)
}
  0x4b   :  { %s3552_s26 = scalar_lea.vmem %s3914_s23, 1024  ;;  %p3557_p0 = scmp.lt.s32.totalorder %s3914_s23, %s3914_s23 }
  0x4c   :  { %p3553_p13 = scmp.ne.s32.totalorder %s3914_s23, %s3552_s26  ;;  %p3558_p1 = scmp.lt.s32.totalorder %s3552_s26, %s3552_s26 }
  0x4e   :  { %p3559_p2 = por %p3558_p1, %p3557_p0 }
  0x50   :  { %p3560_p3 = pnand %p3559_p2, %p3553_p13 }
  0x52   :  { %3563 = shalt.err (!%p3560_p3)
}
  0x53   :  { %s3762_s7 = smov 128   ;;  %s3763_s1 = smov 8  }
  0x54   :  { %124 = dma.hbm_to_vmem [thread:$0]  %s4454_s10, 1024, %s3914_s23, [#allocation16], %s3762_s7, %s3762_s7, %s3763_s1  }
  0x55   :  { %s3764_s5 = smov [#allocation3]   ;;  %s3765_s2 = smov [#allocation8]  }
  0x56   :  { %s42_s21 = sshll.u32 %s3764_s5, 4  ;;  %s67_s0 = sshll.u32 %s3765_s2, 4  ;;  %s43_s21 = int_to_ptr.vmem [resolvable:$true] %s42_s21  ;;  %s68_s0 = int_to_ptr.vmem [resolvable:$true] %s67_s0 }
  0x57   :  { %s4477_s24 = sld [smem:[#allocation33_spill]] }
  0x5d   :  { %s3564_s28 = scalar_lea.hbm %s4477_s24, 64 }
  0x5e   :  { %p3565_p4 = scmp.ne.s32.totalorder %s4477_s24, %s3564_s28  ;;  %p3568_p5 = scmp.lt.u32.totalorder %s3564_s28, %s4477_s24 }
  0x60   :  { %p3570_p6 = pnand %p3568_p5, %p3565_p4 }
  0x62   :  { %3573 = shalt.err (!%p3570_p6)
}
  0x63   :  { %s3574_s10 = scalar_lea.vmem %s43_s21, 64  ;;  %p3579_p8 = scmp.lt.s32.totalorder %s43_s21, %s43_s21 }
  0x64   :  { %p3575_p7 = scmp.ne.s32.totalorder %s43_s21, %s3574_s10  ;;  %p3580_p9 = scmp.lt.s32.totalorder %s3574_s10, %s3574_s10 }
  0x66   :  { %p3581_p10 = por %p3580_p9, %p3579_p8 }
  0x68   :  { %p3582_p11 = pnand %p3581_p10, %p3575_p7 }
  0x6a   :  { %3585 = shalt.err (!%p3582_p11)
}
  0x6b   :  { %s4478_s23 = smov 2   ;;  %s4479_s7 = smov 32  }
  0x6c   :  { %48 = dma.hbm_to_vmem [thread:$0]  %s4477_s24, 64, %s43_s21, [#allocation4], %s4479_s7, %s4479_s7, %s4478_s23  }
  0x6d   :  { %s3586_s29 = scalar_lea.hbm %s4448_s4, 128 }
  0x6e   :  { %p3587_p12 = scmp.ne.s32.totalorder %s4448_s4, %s3586_s29  ;;  %p3590_p13 = scmp.lt.u32.totalorder %s3586_s29, %s4448_s4 }
  0x70   :  { %p3592_p0 = pnand %p3590_p13, %p3587_p12 }
  0x72   :  { %3595 = shalt.err (!%p3592_p0)
}
  0x73   :  { %s3596_s25 = scalar_lea.vmem %s68_s0, 128  ;;  %p3601_p2 = scmp.lt.s32.totalorder %s68_s0, %s68_s0 }
  0x74   :  { %p3597_p1 = scmp.ne.s32.totalorder %s68_s0, %s3596_s25  ;;  %p3602_p3 = scmp.lt.s32.totalorder %s3596_s25, %s3596_s25 }
  0x76   :  { %p3603_p4 = por %p3602_p3, %p3601_p2 }
  0x78   :  { %p3604_p5 = pnand %p3603_p4, %p3597_p1 }
  0x7a   :  { %3607 = shalt.err (!%p3604_p5)
}
  0x7b   :  { %70 = dma.hbm_to_vmem [thread:$0]  %s4448_s4, 128, %s68_s0, [#allocation7]  }
  0x7c   :  { %s3766_s3 = smov [#allocation11]   ;;  %s3767_s10 = smov [#allocation14]  }
  0x7d   :  { %s87_s26 = sshll.u32 %s3766_s3, 4  ;;  %s107_s1 = sshll.u32 %s3767_s10, 4  ;;  %s88_s26 = int_to_ptr.vmem [resolvable:$true] %s87_s26  ;;  %s108_s1 = int_to_ptr.vmem [resolvable:$true] %s107_s1 }
  0x7e   :  { %s3608_s5 = scalar_lea.hbm %s4450_s6, 128 }
  0x7f   :  { %p3609_p6 = scmp.ne.s32.totalorder %s4450_s6, %s3608_s5  ;;  %p3612_p7 = scmp.lt.u32.totalorder %s3608_s5, %s4450_s6 }
  0x81   :  { %p3614_p8 = pnand %p3612_p7, %p3609_p6 }
  0x83   :  { %3617 = shalt.err (!%p3614_p8)
}
  0x84   :  { %s3618_s4 = scalar_lea.vmem %s88_s26, 128  ;;  %p3623_p10 = scmp.lt.s32.totalorder %s88_s26, %s88_s26 }
  0x85   :  { %p3619_p9 = scmp.ne.s32.totalorder %s88_s26, %s3618_s4  ;;  %p3624_p11 = scmp.lt.s32.totalorder %s3618_s4, %s3618_s4 }
  0x87   :  { %p3625_p12 = por %p3624_p11, %p3623_p10 }
  0x89   :  { %p3626_p13 = pnand %p3625_p12, %p3619_p9 }
  0x8b   :  { %3629 = shalt.err (!%p3626_p13)
}
  0x8c   :  { %90 = dma.hbm_to_vmem [thread:$0]  %s4450_s6, 128, %s88_s26, [#allocation10]  }
  0x8d   :  { %s3630_s24 = scalar_lea.hbm %s4452_s8, 16 }
  0x8e   :  { %p3631_p0 = scmp.ne.s32.totalorder %s4452_s8, %s3630_s24  ;;  %p3634_p1 = scmp.lt.u32.totalorder %s3630_s24, %s4452_s8 }
  0x90   :  { %p3636_p2 = pnand %p3634_p1, %p3631_p0 }
  0x92   :  { %3639 = shalt.err (!%p3636_p2)
}
  0x93   :  { %s3640_s5 = scalar_lea.vmem %s108_s1, 16  ;;  %s3644_s29 = scalar_lea.vmem %s108_s1, 32 }
  0x94   :  { %p3641_p3 = scmp.ne.s32.totalorder %s108_s1, %s3640_s5  ;;  %p3645_p4 = scmp.lt.s32.totalorder %s108_s1, %s108_s1 }
  0x95   :  { %p3646_p5 = scmp.lt.s32.totalorder %s3644_s29, %s3640_s5 }
  0x97   :  { %p3647_p6 = por %p3646_p5, %p3645_p4 }
  0x99   :  { %p3648_p7 = pnand %p3647_p6, %p3641_p3 }
  0x9b   :  { %3651 = shalt.err (!%p3648_p7)
}
  0x9c   :  { %110 = dma.hbm_to_vmem [thread:$0]  %s4452_s8, 16, %s108_s1, [#allocation13]  }
  0x9d   :  { %s3768_s2 = smov [#allocation17]   ;;  %s3652_s0 = scalar_lea.hbm %s4455_s11, 32 }
  0x9e   :  { %s130_s20 = sshll.u32 %s3768_s2, 4  ;;  %p3653_p8 = scmp.ne.s32.totalorder %s4455_s11, %s3652_s0  ;;  %s131_s20 = int_to_ptr.vmem [resolvable:$true] %s130_s20 }
  0x9f   :  { %p3656_p9 = scmp.lt.u32.totalorder %s3652_s0, %s4455_s11 }
  0xa1   :  { %p3658_p10 = pnand %p3656_p9, %p3653_p8 }
  0xa3   :  { %3661 = shalt.err (!%p3658_p10)
}
  0xa4   :  { %s3662_s3 = scalar_lea.vmem %s131_s20, 32  ;;  %p3667_p12 = scmp.lt.s32.totalorder %s131_s20, %s131_s20 }
  0xa5   :  { %p3663_p11 = scmp.ne.s32.totalorder %s131_s20, %s3662_s3  ;;  %p3668_p13 = scmp.lt.s32.totalorder %s3662_s3, %s3662_s3 }
  0xa7   :  { %p3669_p0 = por %p3668_p13, %p3667_p12 }
  0xa9   :  { %p3670_p1 = pnand %p3669_p0, %p3663_p11 }
  0xab   :  { %3673 = shalt.err (!%p3670_p1)
}
  0xac   :  { %s3769_s8 = smov 16   ;;  %s3770_s1 = smov 1  }
  0xad   :  { %136 = dma.hbm_to_vmem [thread:$0]  %s4455_s11, 32, %s131_s20, [#allocation16], %s3769_s8, %s3769_s8, %s3770_s1  }
  0xae   :  { %s3771_s30 = smov [#allocation18]   ;;  %s3674_s26 = scalar_lea.hbm %s4458_s14, 16 }
  0xaf   :  { %s147_s5 = sshll.u32 %s3771_s30, 4  ;;  %p3675_p2 = scmp.ne.s32.totalorder %s4458_s14, %s3674_s26  ;;  %s148_s5 = int_to_ptr.vmem [resolvable:$true] %s147_s5 }
  0xb0   :  { %p3678_p3 = scmp.lt.u32.totalorder %s3674_s26, %s4458_s14 }
  0xb2   :  { %p3680_p4 = pnand %p3678_p3, %p3675_p2 }
  0xb4   :  { %3683 = shalt.err (!%p3680_p4)
}
  0xb5   :  { %s3684_s28 = scalar_lea.vmem %s148_s5, 16  ;;  %s3688_s11 = scalar_lea.vmem %s148_s5, 32 }
  0xb6   :  { %p3685_p5 = scmp.ne.s32.totalorder %s148_s5, %s3684_s28  ;;  %p3689_p6 = scmp.lt.s32.totalorder %s148_s5, %s148_s5 }
  0xb7   :  { %p3690_p7 = scmp.lt.s32.totalorder %s3688_s11, %s3684_s28 }
  0xb9   :  { %p3691_p8 = por %p3690_p7, %p3689_p6 }
  0xbb   :  { %p3692_p9 = pnand %p3691_p8, %p3685_p5 }
  0xbd   :  { %3695 = shalt.err (!%p3692_p9)
}
  0xbe   :  { %150 = dma.hbm_to_vmem [thread:$0]  %s4458_s14, 16, %s148_s5, [#allocation19]  }
  0xbf   :  { %3740 = dma.done.wait [#allocation4], 64  }
  0xc0   :  { %3741 = vsyncadd [#allocation4], 4294967232 }
  0xc1   :  { %3742 = dma.done.wait [#allocation7], 192  }
  0xc2   :  { %3743 = vsyncadd [#allocation7], 4294967104 }
  0xc3   :  { %3744 = dma.done.wait [#allocation10], 144  }
  0xc4   :  { %3745 = vsyncadd [#allocation10], 4294967152 }
  0xc5   :  { %3746 = dma.done.wait [#allocation13], 80  }
  0xc6   :  { %3747 = vsyncadd [#allocation13], 4294967216 }
  0xc7   :  { %3748 = dma.done.wait [#allocation16], 1056  }
  0xc8   :  { %3749 = vsyncadd [#allocation16], 4294966240 }
  0xc9   :  { %3750 = dma.done.wait [#allocation19], 16  }
  0xca   :  { %3751 = vsyncadd [#allocation19], 4294967280  ;;  %vm294_vm0 = vcmask 1042432   ;;  %vm287_vm1 = vcmask 23552   ;;  %v286_v0 = vld [vmem:[#allocation12] sm:$0x7] }
  0xcb   :  { %s4480_s3 = sld [smem:[#allocation32_spill]]  ;;  %vm204_vm2 = vcmask 1045504   ;;  %2940 = vmatprep.subr.msk.mxu1 %vm294_vm0, %v286_v0  ;;  %v285_v3 = vld [vmem:[#allocation11] sm:$0x3f]  ;;  %s4481_s27 = sld [smem:[#allocation31_spill]]  ;;  %vm197_vm3 = vcmask 48128  }
  0xcc   :  { %2941 = vmatpush3.msk.msra.mxu1 %vm294_vm0, %v286_v0  ;;  %v189_v5 = vld [vmem:[#allocation8] sm:$0x3f]  ;;  %v462_v6 = vld [vmem:[%s4453_s9] sm:$0xff]  ;;  %v463_v7 = vld [vmem:[%s4453_s9 + $0x8] sm:$0xff]  ;;  %v3772_v15 = vmov 0.0|0.0   ;;  %vm473_vm4 = vcmask 261120  }
  0xcd   :  { %2945 = vmatprep.subr.msk.mxu1 %vm204_vm2, %v285_v3  ;;  %v3181_v8 = vpack.c.bf16 %v463_v7, %v462_v6  ;;  %2935 = vmatprep.subr.msk.mxu0 %vm204_vm2, %v189_v5  ;;  %v555_v10 = vld [vmem:[#allocation15] sm:$0xff]  ;;  %v556_v11 = vld [vmem:[#allocation15 + $0x8] sm:$0xff]  ;;  %v557_v17 = vld [vmem:[#allocation15 + $0x10] sm:$0xff]  ;;  %vm3773_vm5 = vmmov 0   ;;  %v3774_v21 = vmov 0.0   ;;  %s3775_s11 = smov 64  }
  0xce   :  { %2936 = vmatpush3.msk.msra.mxu0 %vm204_vm2, %v189_v5  ;;  %v464_v12 = vld [vmem:[%s4453_s9 + $0x10] sm:$0xff]  ;;  %v465_v13 = vld [vmem:[%s4453_s9 + $0x18] sm:$0xff]  ;;  %v4054_v14 = vpack.c.bf16 %v556_v11, %v555_v10  ;;  %v558_v18 = vld [vmem:[#allocation15 + $0x18] sm:$0xff]  ;;  %vm667_vm6 = vcmask 254976   ;;  %vm776_vm7 = vcmask 257026   ;;  %vm1000_vm8 = vcmask 261126  }
  0xcf   :  { %3182 = vmatprep.subr.bf16.mxu0 %v3181_v8  ;;  %v3185_v16 = vpack.c.bf16 %v465_v13, %v464_v12  ;;  %v4059_v19 = vpack.c.bf16 %v558_v18, %v557_v17  ;;  %v559_v20 = vld [vmem:[#allocation3] sm:$0x3]  ;;  %v2765_v24 = vld [vmem:[#allocation14] ss:$0 sm:$0xff]  ;;  %v560_v40 = vld [vmem:[#allocation6] sm:$0x3] }
  0xd0   :  { %v2766_v33 = vld [vmem:[#allocation17] ss:$0 sm:$0xff]  ;;  %vm888_vm9 = vcmask 259076   ;;  %s3777_s10 = smov [#allocation20]   ;;  %s3778_s30 = smov [#allocation21]  }
  0xd1   :  { %v187_v1 = vld [vmem:[%s4480_s3] sm:$0xff]  ;;  %v188_v2 = vld [vmem:[%s4480_s3 + $0x8] sm:$0xff]  ;;  %s2732_s5 = sshll.u32 %s3778_s30, 4  ;;  %s4396_s5 = int_to_ptr.vmem [resolvable:$true] %s2732_s5 }
  0xd2   :  { %2942 = vmatprep.mubr.msk.f32.mxu1 %vm287_vm1, %v187_v1  ;;  %v185_v4 = vld [vmem:[%s4481_s27] sm:$0xff]  ;;  %v186_v9 = vld [vmem:[%s4481_s27 + $0x8] sm:$0xff]  ;;  %s2720_s27 = sshll.u32 %s3777_s10, 4  ;;  %s2721_s27 = int_to_ptr.vmem [resolvable:$true] %s2720_s27 }
  0xd3   :  { %2937 = vmatprep.mubr.msk.f32.mxu0 %vm197_vm3, %v185_v4  ;;  %2943 = vmatmul.mubr.msk.f32.vlgmr.msra.gmra.mrb[0].mxu1 %vm287_vm1, %v188_v2  ;;  %p3701_p11 = scmp.lt.s32.totalorder %s2721_s27, %s2721_s27 }
  0xd4   :  { %2946 = vmatpush3.msk.msra.mxu1 %vm204_vm2, %v285_v3  ;;  %2947 = vmatprep.mubr.msk.f32.mxu1 %vm197_vm3, %v185_v4 }
  0xd5   :  { %2938 = vmatmul.mubr.msk.f32.vlgmr.msra.gmra.mrb[0].mxu0 %vm197_vm3, %v186_v9  ;;  %3189 = vmatprep.subr.bf16.mxu1 %v3772_v15 }
  0xd6   :  { %3184 = vmatpush3.bf16.msra.mxu0 %v3181_v8 }
  0xd7   :  { %3186 = vmatprep.subr.bf16.mxu0 %v3185_v16 }
  0xda   :  { %3188 = vmatpush3.bf16.msra.mxu0 %v3185_v16 }
  0xdb   :  { %2948 = vmatmul.mubr.msk.f32.vlgmr.msra.gmra.mrb[0].mxu1 %vm197_vm3, %v186_v9  ;;  %3195 = vmatprep.subr.bf16.mxu0 %v3772_v15 }
  0xdc   :  { %3191 = vmatpush3.bf16.msra.mxu1 %v4054_v14  ;;  %2969 = vmatprep.mubr.msk.f32.mxu1 %vm3773_vm5, %v3774_v21 }
  0xdd   :  { %3192 = vmatprep.subr.bf16.mxu1 %v3772_v15 }
  0xe0   :  { %3194 = vmatpush3.bf16.msra.mxu1 %v4059_v19 }
  0xe1   :  { %3201 = vmatprep.subr.bf16.mxu1 %v3772_v15 }
  0xe3   :  { %2970 = vmatmul.mubr.msk.f32.vlgmr.msra.gmra.mrb[2].mxu1 %vm473_vm4, %v559_v20 }
  0xe4   :  { %3203 = vmatpush3.bf16.msra.mxu1 %v4054_v14  ;;  %2991 = vmatprep.mubr.msk.f32.mxu1 %vm3773_vm5, %v3774_v21 }
  0xe5   :  { %3204 = vmatprep.subr.bf16.mxu1 %v3772_v15 }
  0xe8   :  { %3206 = vmatpush3.bf16.msra.mxu1 %v4059_v19 }
  0xe9   :  { %3213 = vmatprep.subr.bf16.mxu1 %v3772_v15 }
 0x1a8   :  { %v4073_v22 = vpop.f32.mrb[0].mxu0 }
 0x1a9   :  { %v4075_v23 = vpop.f32.mrb[1].mxu0 }
 0x1ae   :  { %v2949_v25 = vpop.f32.mrb[0].mxu1 }
 0x1af   :  { %v459_v26 = vadd.f32 %v2949_v25, %v2765_v24  ;;  %v442_v27 = vpop.f32.mrb[1].mxu1 }
 0x1b0   :  { %v458_v28 = vadd.f32 %v2765_v24, %v442_v27 }
 0x1b1   :  { %v461_v30 = vmax.f32 %v459_v26, 0.0 }
 0x1b2   :  { %v460_v29 = vmax.f32 %v458_v28, 0.0 }
 0x1b4   :  { %2958 = vmatprep.mubr.msk.f32.mxu0 %vm473_vm4, %v460_v29 }
 0x1b5   :  { %2959 = vmatmul.mubr.msk.f32.vlgmr.msra.gmra.mrb[2].mxu0 %vm473_vm4, %v461_v30 }
 0x1b6   :  { %3197 = vmatpush3.bf16.msra.mxu0 %v4054_v14  ;;  %2980 = vmatprep.mubr.msk.f32.mxu0 %vm3773_vm5, %v3774_v21  ;;  %v630_v31 = vpop.f32.mrb[2].mxu1 }
 0x1b7   :  { %3198 = vmatprep.subr.bf16.mxu0 %v3772_v15  ;;  %v2971_v32 = vpop.f32.mrb[3].mxu1 }
 0x1ba   :  { %3200 = vmatpush3.bf16.msra.mxu0 %v4059_v19 }
 0x1bb   :  { %3207 = vmatprep.subr.bf16.mxu0 %v3772_v15 }
 0x288   :  { %v2960_v34 = vpop.f32.mrb[2].mxu0 }
 0x289   :  { %v4085_v35 = vadd.f32 %v2960_v34, %v2766_v33  ;;  %v546_v36 = vpop.f32.mrb[3].mxu0 }
 0x28a   :  { %v4087_v37 = vadd.f32 %v2766_v33, %v546_v36 }
 0x28c   :  { %v634_v38 = vadd.f32 %v630_v31, %v4087_v37 }
 0x28e   :  { %3344 = vtanh.f32 %v634_v38  ;;  %v2770_v41 = vmul.f32 -1.442695, %v634_v38 }
 0x290   :  { %3346 = vpow2.f32 %v2770_v41 }
 0x298   :  { %v3345_v39 = vpop.eup %3344 }
 0x299   :  { %648 = vrot.lane.b32.xlu0 %v3345_v39, %s3775_s11 }
 0x29a   :  { %v3347_v42 = vpop.eup %3346 }
 0x29b   :  { %v638_v43 = vadd.f32 1.0, %v3347_v42 }
 0x29d   :  { %643 = vrot.lane.b32.xlu0 %v560_v40, %s4479_s7  ;;  %3348 = vrcp.f32 %v638_v43 }
 0x2a7   :  { %v3349_v44 = vpop.eup %3348 }
 0x30b   :  { %v649_v45 = vpop.permute.xlu0 %648 }
 0x30c   :  { %v651_v46 = vmul.f32 %v3349_v44, %v649_v45 }
 0x30e   :  { %653 = vrot.lane.b32.xlu1 %v651_v46, %s4479_s7 }
 0x30f   :  { %v644_v47 = vpop.permute.xlu0 %643 }
 0x310   :  { %v646_v48 = vmul.f32 %v3349_v44, %v644_v47 }
 0x380   :  { %v654_v49 = vpop.permute.xlu1 %653 }
 0x381   :  { %v656_v50 = vadd.f32 %v654_v49, %v646_v48 }
 0x383   :  { %3350 = vtanh.f32 %v656_v50  ;;  %v753_v2 = vrot.slane %v656_v50, 6 }
 0x38d   :  { %v3351_v51 = vpop.eup %3350 }
 0x38e   :  { %659 = vrot.lane.b32.xlu1 %v3351_v51, %s3775_s11 }
 0x400   :  { %v660_v52 = vpop.permute.xlu1 %659 }
 0x401   :  { %v662_v53 = vmul.f32 %v3349_v44, %v660_v52 }
 0x403   :  { %664 = vrot.lane.b32.xlu0 %v662_v53, %s4479_s7 }
 0x475   :  { %v665_v54 = vpop.permute.xlu0 %664 }
 0x476   :  { %668 = vst.msk [vmem:[#allocation2] sm:$0x3] %vm667_vm6, %v665_v54  ;;  %2981 = vmatmul.mubr.msk.f32.vlgmr.msra.gmra.mrb[4].mxu0 %vm473_vm4, %v665_v54 }
 0x477   :  { %3209 = vmatpush3.bf16.msra.mxu0 %v4054_v14  ;;  %3002 = vmatprep.mubr.msk.f32.mxu0 %vm3773_vm5, %v3774_v21 }
 0x478   :  { %3210 = vmatprep.subr.bf16.mxu0 %v3772_v15 }
 0x47b   :  { %3212 = vmatpush3.bf16.msra.mxu0 %v4059_v19 }
 0x47c   :  { %3219 = vmatprep.subr.bf16.mxu0 %v3772_v15 }
 0x549   :  { %v737_v55 = vpop.f32.mrb[4].mxu0 }
 0x54a   :  { %v742_v56 = vrot.slane %v737_v55, 6  ;;  %v2982_v57 = vpop.f32.mrb[5].mxu0 }
 0x54c   :  { %v744_v58 = vadd.f32 %v742_v56, %v4087_v37 }
 0x54e   :  { %3352 = vtanh.f32 %v744_v58  ;;  %v2772_v60 = vmul.f32 -1.442695, %v744_v58 }
 0x550   :  { %3354 = vpow2.f32 %v2772_v60 }
 0x558   :  { %v3353_v59 = vpop.eup %3352 }
 0x559   :  { %757 = vrot.lane.b32.xlu1 %v3353_v59, %s3775_s11 }
 0x55a   :  { %v3355_v61 = vpop.eup %3354 }
 0x55b   :  { %v748_v62 = vadd.f32 1.0, %v3355_v61 }
 0x55d   :  { %3356 = vrcp.f32 %v748_v62 }
 0x567   :  { %v3357_v63 = vpop.eup %3356 }
 0x568   :  { %v755_v3 = vmul.f32 %v3357_v63, %v753_v2 }
 0x5cb   :  { %v758_v0 = vpop.permute.xlu1 %757 }
 0x5cc   :  { %v760_v1 = vmul.f32 %v3357_v63, %v758_v0 }
 0x5ce   :  { %762 = vrot.lane.b32.xlu0 %v760_v1, %s4479_s7 }
 0x640   :  { %v763_v4 = vpop.permute.xlu0 %762 }
 0x641   :  { %v765_v5 = vadd.f32 %v763_v4, %v755_v3 }
 0x643   :  { %3358 = vtanh.f32 %v765_v5  ;;  %v865_v28 = vrot.slane %v765_v5, 6 }
 0x64d   :  { %v3359_v6 = vpop.eup %3358 }
 0x64e   :  { %768 = vrot.lane.b32.xlu1 %v3359_v6, %s3775_s11 }
 0x6c0   :  { %v769_v7 = vpop.permute.xlu1 %768 }
 0x6c1   :  { %v4107_v8 = vmul.f32 %v3357_v63, %v769_v7 }
 0x6c3   :  { %v778_v9 = vrot.slane %v4107_v8, 2 }
 0x6c5   :  { %779 = vrot.lane.b32.xlu0 %v778_v9, %s4479_s7 }
 0x737   :  { %v780_v10 = vpop.permute.xlu0 %779 }
 0x738   :  { %2992 = vmatmul.mubr.msk.f32.vlgmr.msra.gmra.mrb[4].mxu1 %vm473_vm4, %v780_v10 }
 0x739   :  { %3215 = vmatpush3.bf16.msra.mxu1 %v4054_v14  ;;  %3013 = vmatprep.mubr.msk.f32.mxu1 %vm3773_vm5, %v3774_v21 }
 0x73a   :  { %3216 = vmatprep.subr.bf16.mxu1 %v3772_v15 }
 0x73d   :  { %3218 = vmatpush3.bf16.msra.mxu1 %v4059_v19 }
 0x73e   :  { %3225 = vmatprep.subr.bf16.mxu1 %v3772_v15 }
 0x80b   :  { %v849_v11 = vpop.f32.mrb[4].mxu1 }
 0x80c   :  { %v854_v12 = vrot.slane %v849_v11, 4  ;;  %v2993_v13 = vpop.f32.mrb[5].mxu1 }
 0x80e   :  { %v856_v16 = vadd.f32 %v854_v12, %v4087_v37 }
 0x810   :  { %3360 = vtanh.f32 %v856_v16  ;;  %v2774_v18 = vmul.f32 -1.442695, %v856_v16 }
 0x812   :  { %3362 = vpow2.f32 %v2774_v18 }
 0x81a   :  { %v3361_v17 = vpop.eup %3360 }
 0x81b   :  { %869 = vrot.lane.b32.xlu1 %v3361_v17, %s3775_s11 }
 0x81c   :  { %v3363_v20 = vpop.eup %3362 }
 0x81d   :  { %v860_v24 = vadd.f32 1.0, %v3363_v20 }
 0x81f   :  { %3364 = vrcp.f32 %v860_v24 }
 0x829   :  { %v3365_v25 = vpop.eup %3364 }
 0x82a   :  { %v867_v29 = vmul.f32 %v3365_v25, %v865_v28 }
 0x88d   :  { %v870_v26 = vpop.permute.xlu1 %869 }
 0x88e   :  { %v872_v27 = vmul.f32 %v3365_v25, %v870_v26 }
 0x890   :  { %874 = vrot.lane.b32.xlu0 %v872_v27, %s4479_s7 }
 0x902   :  { %v875_v30 = vpop.permute.xlu0 %874 }
 0x903   :  { %v877_v31 = vadd.f32 %v875_v30, %v867_v29 }
 0x905   :  { %3366 = vtanh.f32 %v877_v31  ;;  %v977_v50 = vrot.slane %v877_v31, 6 }
 0x90f   :  { %v3367_v32 = vpop.eup %3366 }
 0x910   :  { %880 = vrot.lane.b32.xlu1 %v3367_v32, %s3775_s11 }
 0x982   :  { %v881_v33 = vpop.permute.xlu1 %880 }
 0x983   :  { %v4122_v34 = vmul.f32 %v3365_v25, %v881_v33 }
 0x985   :  { %v890_v36 = vrot.slane %v4122_v34, 4 }
 0x987   :  { %891 = vrot.lane.b32.xlu0 %v890_v36, %s4479_s7 }
 0x9f9   :  { %v892_v38 = vpop.permute.xlu0 %891 }
 0x9fa   :  { %3003 = vmatmul.mubr.msk.f32.vlgmr.msra.gmra.mrb[6].mxu0 %vm473_vm4, %v892_v38 }
 0x9fb   :  { %3221 = vmatpush3.bf16.msra.mxu0 %v4054_v14  ;;  %3024 = vmatprep.mubr.msk.f32.mxu0 %vm3773_vm5, %v3774_v21 }
 0x9fc   :  { %3222 = vmatprep.subr.bf16.mxu0 %v3772_v15 }
 0x9ff   :  { %3224 = vmatpush3.bf16.msra.mxu0 %v4059_v19 }
 0xa00   :  { %3231 = vmatprep.subr.bf16.mxu0 %v3772_v15 }
 0xacd   :  { %v961_v39 = vpop.f32.mrb[6].mxu0 }
 0xace   :  { %v966_v40 = vrot.slane %v961_v39, 2  ;;  %v3004_v41 = vpop.f32.mrb[7].mxu0 }
 0xad0   :  { %v968_v42 = vadd.f32 %v966_v40, %v4087_v37 }
 0xad2   :  { %3368 = vtanh.f32 %v968_v42  ;;  %v2776_v44 = vmul.f32 -1.442695, %v968_v42 }
 0xad4   :  { %3370 = vpow2.f32 %v2776_v44 }
 0xadc   :  { %v3369_v43 = vpop.eup %3368 }
 0xadd   :  { %981 = vrot.lane.b32.xlu1 %v3369_v43, %s3775_s11 }
 0xade   :  { %v3371_v45 = vpop.eup %3370 }
 0xadf   :  { %v972_v46 = vadd.f32 1.0, %v3371_v45 }
 0xae1   :  { %3372 = vrcp.f32 %v972_v46 }
 0xaeb   :  { %v3373_v47 = vpop.eup %3372 }
 0xaec   :  { %v979_v51 = vmul.f32 %v3373_v47, %v977_v50 }
 0xb4f   :  { %v982_v48 = vpop.permute.xlu1 %981 }
 0xb50   :  { %v984_v49 = vmul.f32 %v3373_v47, %v982_v48 }
 0xb52   :  { %986 = vrot.lane.b32.xlu0 %v984_v49, %s4479_s7 }
 0xbc4   :  { %v987_v52 = vpop.permute.xlu0 %986 }
 0xbc5   :  { %v989_v53 = vadd.f32 %v987_v52, %v979_v51 }
 0xbc7   :  { %3374 = vtanh.f32 %v989_v53  ;;  %v1086_v4 = vrot.slane %v989_v53, 6 }
 0xbd1   :  { %v3375_v37 = vpop.eup %3374 }
 0xbd2   :  { %992 = vrot.lane.b32.xlu1 %v3375_v37, %s3775_s11 }
 0xc44   :  { %v993_v54 = vpop.permute.xlu1 %992 }
 0xc45   :  { %v4137_v55 = vmul.f32 %v3373_v47, %v993_v54 }
 0xc47   :  { %v1002_v56 = vrot.slane %v4137_v55, 6 }
 0xc49   :  { %1003 = vrot.lane.b32.xlu0 %v1002_v56, %s4479_s7 }
 0xcbb   :  { %v1004_v57 = vpop.permute.xlu0 %1003 }
 0xcbc   :  { %3014 = vmatmul.mubr.msk.f32.vlgmr.msra.gmra.mrb[6].mxu1 %vm473_vm4, %v1004_v57 }
 0xcbd   :  { %3227 = vmatpush3.bf16.msra.mxu1 %v4054_v14  ;;  %3035 = vmatprep.mubr.msk.f32.mxu1 %vm3773_vm5, %v3774_v21 }
 0xcbe   :  { %3228 = vmatprep.subr.bf16.mxu1 %v3772_v15 }
 0xcc1   :  { %3230 = vmatpush3.bf16.msra.mxu1 %v4059_v19 }
 0xd8f   :  { %v1073_v58 = vpop.f32.mrb[6].mxu1 }
 0xd90   :  { %v1077_v59 = vadd.f32 %v1073_v58, %v4085_v35  ;;  %v3015_v60 = vpop.f32.mrb[7].mxu1 }
 0xd92   :  { %3376 = vtanh.f32 %v1077_v59  ;;  %v2778_v62 = vmul.f32 -1.442695, %v1077_v59 }
 0xd94   :  { %3378 = vpow2.f32 %v2778_v62 }
 0xd9c   :  { %v3377_v61 = vpop.eup %3376 }
 0xd9d   :  { %1090 = vrot.lane.b32.xlu1 %v3377_v61, %s3775_s11 }
 0xd9e   :  { %v3379_v63 = vpop.eup %3378 }
 0xd9f   :  { %v1081_v0 = vadd.f32 1.0, %v3379_v63 }
 0xda1   :  { %3380 = vrcp.f32 %v1081_v0 }
 0xdab   :  { %v3381_v1 = vpop.eup %3380 }
 0xdac   :  { %v1088_v5 = vmul.f32 %v3381_v1, %v1086_v4 }
 0xe0f   :  { %v1091_v2 = vpop.permute.xlu1 %1090 }
 0xe10   :  { %v1093_v3 = vmul.f32 %v3381_v1, %v1091_v2 }
 0xe12   :  { %1095 = vrot.lane.b32.xlu0 %v1093_v3, %s4479_s7 }
 0xe84   :  { %v1096_v6 = vpop.permute.xlu0 %1095 }
 0xe85   :  { %v1098_v7 = vadd.f32 %v1096_v6, %v1088_v5 }
 0xe87   :  { %3382 = vtanh.f32 %v1098_v7 }
 0xe91   :  { %v3383_v9 = vpop.eup %3382 }
 0xe92   :  { %1101 = vrot.lane.b32.xlu1 %v3383_v9, %s3775_s11 }
 0xf04   :  { %v1102_v10 = vpop.permute.xlu1 %1101 }
 0xf05   :  { %v1104_v11 = vmul.f32 %v3381_v1, %v1102_v10 }
 0xf07   :  { %1106 = vrot.lane.b32.xlu0 %v1104_v11, %s4479_s7 }
 0xf79   :  { %v1107_v12 = vpop.permute.xlu0 %1106 }
 0xf7a   :  { %1109 = vst.msk [vmem:[#allocation2 + $0x8] sm:$0x3] %vm667_vm6, %v1107_v12  ;;  %3025 = vmatmul.mubr.msk.f32.vlgmr.msra.gmra.mrb[8].mxu0 %vm473_vm4, %v1107_v12 }
 0xf7b   :  { %3233 = vmatpush3.bf16.msra.mxu0 %v4054_v14  ;;  %3046 = vmatprep.mubr.msk.f32.mxu0 %vm3773_vm5, %v3774_v21 }
 0xf7c   :  { %3234 = vmatprep.subr.bf16.mxu0 %v3772_v15 }
 0xf7f   :  { %3236 = vmatpush3.bf16.msra.mxu0 %v4059_v19  ;;  %v1194_v19 = vrot.slane %v1098_v7, 6 }
 0xf80   :  { %3245 = vmatprep.subr.bf16.mxu0 %v3772_v15 }
0x104d   :  { %v1178_v13 = vpop.f32.mrb[8].mxu0 }
0x104e   :  { %v1183_v16 = vrot.slane %v1178_v13, 6  ;;  %v3026_v17 = vpop.f32.mrb[9].mxu0  ;;  %v2785_v13 = vld [vmem:[%s4453_s9 + $0x20] sm:$0xff] }
0x1050   :  { %v1185_v18 = vadd.f32 %v1183_v16, %v4085_v35  ;;  %v2786_v16 = vld [vmem:[%s4453_s9 + $0x28] sm:$0xff] }
0x1051   :  { %v3237_v17 = vpack.c.bf16 %v2786_v16, %v2785_v13 }
0x1052   :  { %3384 = vtanh.f32 %v1185_v18  ;;  %v2780_v24 = vmul.f32 -1.442695, %v1185_v18  ;;  %v2787_v18 = vld [vmem:[%s4453_s9 + $0x30] sm:$0xff] }
0x1053   :  { %3238 = vmatprep.subr.bf16.mxu1 %v3237_v17 }
0x1054   :  { %3386 = vpow2.f32 %v2780_v24 }
0x105c   :  { %v3385_v20 = vpop.eup %3384 }
0x105d   :  { %1198 = vrot.lane.b32.xlu1 %v3385_v20, %s3775_s11  ;;  %v1543_v20 = vld [vmem:[#allocation15 + $0x20] sm:$0xff] }
0x105e   :  { %v3387_v14 = vpop.eup %3386 }
0x105f   :  { %v1189_v25 = vadd.f32 1.0, %v3387_v14  ;;  %v1544_v14 = vld [vmem:[#allocation15 + $0x28] sm:$0xff] }
0x1061   :  { %3388 = vrcp.f32 %v1189_v25  ;;  %v4208_v25 = vpack.c.bf16 %v1544_v14, %v1543_v20 }
0x106b   :  { %v3389_v26 = vpop.eup %3388 }
0x106c   :  { %v1196_v29 = vmul.f32 %v3389_v26, %v1194_v19  ;;  %v1548_v19 = vld [vmem:[#allocation3 + $0x2] sm:$0x3] }
0x10cf   :  { %v1199_v27 = vpop.permute.xlu1 %1198 }
0x10d0   :  { %v1201_v28 = vmul.f32 %v3389_v26, %v1199_v27  ;;  %v1546_v27 = vld [vmem:[#allocation15 + $0x38] sm:$0xff] }
0x10d2   :  { %1203 = vrot.lane.b32.xlu0 %v1201_v28, %s4479_s7 }
0x1144   :  { %v1204_v30 = vpop.permute.xlu0 %1203 }
0x1145   :  { %v1206_v31 = vadd.f32 %v1204_v30, %v1196_v29 }
0x1147   :  { %3390 = vtanh.f32 %v1206_v31  ;;  %v1305_v51 = vrot.slane %v1206_v31, 6 }
0x1151   :  { %v3391_v32 = vpop.eup %3390 }
0x1152   :  { %1209 = vrot.lane.b32.xlu1 %v3391_v32, %s3775_s11  ;;  %v1550_v32 = vld [vmem:[#allocation6 + $0x2] sm:$0x3] }
0x11c4   :  { %v1210_v33 = vpop.permute.xlu1 %1209 }
0x11c5   :  { %v4164_v36 = vmul.f32 %v3389_v26, %v1210_v33  ;;  %v1545_v26 = vld [vmem:[#allocation15 + $0x30] sm:$0xff] }
0x11c6   :  { %v4212_v28 = vpack.c.bf16 %v1546_v27, %v1545_v26 }
0x11c7   :  { %v1218_v38 = vrot.slane %v4164_v36, 2 }
0x11c9   :  { %1219 = vrot.lane.b32.xlu0 %v1218_v38, %s4479_s7 }
0x123b   :  { %v1220_v39 = vpop.permute.xlu0 %1219 }
0x123c   :  { %3036 = vmatmul.mubr.msk.f32.vlgmr.msra.gmra.mrb[8].mxu1 %vm473_vm4, %v1220_v39 }
0x123d   :  { %3240 = vmatpush3.bf16.msra.mxu1 %v3237_v17 }
0x130f   :  { %v1289_v40 = vpop.f32.mrb[8].mxu1 }
0x1310   :  { %v1294_v41 = vrot.slane %v1289_v40, 4  ;;  %v3037_v42 = vpop.f32.mrb[9].mxu1 }
0x1311   :  { %v2789_v42 = vld [vmem:[#allocation17 + $0x1] ss:$0 sm:$0xff] }
0x1312   :  { %v1296_v43 = vadd.f32 %v1294_v41, %v4085_v35 }
0x1314   :  { %3392 = vtanh.f32 %v1296_v43  ;;  %v2782_v45 = vmul.f32 -1.442695, %v1296_v43 }
0x1316   :  { %3394 = vpow2.f32 %v2782_v45 }
0x131e   :  { %v3393_v44 = vpop.eup %3392 }
0x131f   :  { %1309 = vrot.lane.b32.xlu1 %v3393_v44, %s3775_s11 }
0x1320   :  { %v3395_v46 = vpop.eup %3394 }
0x1321   :  { %v1300_v47 = vadd.f32 1.0, %v3395_v46 }
0x1323   :  { %3396 = vrcp.f32 %v1300_v47 }
0x132d   :  { %v3397_v48 = vpop.eup %3396 }
0x132e   :  { %v1307_v52 = vmul.f32 %v3397_v48, %v1305_v51 }
0x1391   :  { %v1310_v49 = vpop.permute.xlu1 %1309 }
0x1392   :  { %v1312_v50 = vmul.f32 %v3397_v48, %v1310_v49 }
0x1394   :  { %1314 = vrot.lane.b32.xlu0 %v1312_v50, %s4479_s7 }
0x1406   :  { %v1315_v53 = vpop.permute.xlu0 %1314 }
0x1407   :  { %v1317_v37 = vadd.f32 %v1315_v53, %v1307_v52 }
0x1409   :  { %3398 = vtanh.f32 %v1317_v37 }
0x1413   :  { %v3399_v54 = vpop.eup %3398 }
0x1414   :  { %1320 = vrot.lane.b32.xlu1 %v3399_v54, %s3775_s11 }
0x1486   :  { %v1321_v56 = vpop.permute.xlu1 %1320 }
0x1487   :  { %v1323_v57 = vmul.f32 %v3397_v48, %v1321_v56 }
0x1489   :  { %v1329_v58 = vrot.slane %v1323_v57, 4 }
0x148b   :  { %1330 = vrot.lane.b32.xlu0 %v1329_v58, %s4479_s7 }
0x14fd   :  { %v1331_v59 = vpop.permute.xlu0 %1330 }
0x14fe   :  { %3047 = vmatmul.mubr.msk.f32.vlgmr.msra.gmra.mrb[10].mxu0 %vm473_vm4, %v1331_v59 }
0x14ff   :  { %3068 = vmatprep.mubr.msk.f32.mxu0 %vm3773_vm5, %v3774_v21  ;;  %3247 = vmatpush3.bf16.msra.mxu0 %v4208_v25 }
0x1500   :  { %3248 = vmatprep.subr.bf16.mxu0 %v3772_v15 }
0x1503   :  { %3250 = vmatpush3.bf16.msra.mxu0 %v4212_v28 }
0x1504   :  { %3257 = vmatprep.subr.bf16.mxu0 %v3772_v15 }
0x1506   :  { %3069 = vmatmul.mubr.msk.f32.vlgmr.msra.gmra.mrb[12].mxu0 %vm473_vm4, %v1548_v19 }
0x1507   :  { %3259 = vmatpush3.bf16.msra.mxu0 %v4208_v25  ;;  %3090 = vmatprep.mubr.msk.f32.mxu0 %vm3773_vm5, %v3774_v21 }
0x1508   :  { %3260 = vmatprep.subr.bf16.mxu0 %v3772_v15 }
0x150b   :  { %3262 = vmatpush3.bf16.msra.mxu0 %v4212_v28 }
0x150c   :  { %3269 = vmatprep.subr.bf16.mxu0 %v3772_v15 }
0x15d1   :  { %v1400_v60 = vpop.f32.mrb[10].mxu0 }
0x15d2   :  { %v1405_v61 = vrot.slane %v1400_v60, 2  ;;  %v3048_v62 = vpop.f32.mrb[11].mxu0 }
0x15d4   :  { %v1407_v63 = vadd.f32 %v1405_v61, %v4085_v35  ;;  %v1416_v35 = vrot.slane %v1317_v37, 6 }
0x15d6   :  { %3400 = vtanh.f32 %v1407_v63  ;;  %v2784_v1 = vmul.f32 -1.442695, %v1407_v63 }
0x15d8   :  { %3402 = vpow2.f32 %v2784_v1 }
0x15d9   :  { %v1620_v40 = vpop.f32.mrb[12].mxu0 }
0x15da   :  { %v3070_v41 = vpop.f32.mrb[13].mxu0 }
0x15e0   :  { %v3401_v0 = vpop.eup %3400 }
0x15e1   :  { %1420 = vrot.lane.b32.xlu1 %v3401_v0, %s3775_s11 }
0x15e2   :  { %v3403_v2 = vpop.eup %3402 }
0x15e3   :  { %v1411_v3 = vadd.f32 1.0, %v3403_v2 }
0x15e5   :  { %3404 = vrcp.f32 %v1411_v3 }
0x15ef   :  { %v3405_v4 = vpop.eup %3404 }
0x15f0   :  { %v1418_v7 = vmul.f32 %v3405_v4, %v1416_v35 }
0x1653   :  { %v1421_v5 = vpop.permute.xlu1 %1420 }
0x1654   :  { %v1423_v6 = vmul.f32 %v3405_v4, %v1421_v5 }
0x1656   :  { %1425 = vrot.lane.b32.xlu0 %v1423_v6, %s4479_s7 }
0x165a   :  { %773 = vrot.lane.b32.xlu0 %v4107_v8, %s4479_s7 }
0x165e   :  { %997 = vrot.lane.b32.xlu0 %v4137_v55, %s4479_s7 }
0x1662   :  { %1325 = vrot.lane.b32.xlu0 %v1323_v57, %s4479_s7 }
0x16c8   :  { %v1426_v9 = vpop.permute.xlu0 %1425 }
0x16c9   :  { %v4185_v10 = vadd.f32 %v1426_v9, %v1418_v7 }
0x16cb   :  { %3406 = vtanh.f32 %v4185_v10 }
0x16cc   :  { %v774_v11 = vpop.permute.xlu0 %773 }
0x16cd   :  { %777 = vst.msk [vmem:[#allocation2] sm:$0xc] %vm776_vm7, %v774_v11 }
0x16d0   :  { %v998_v12 = vpop.permute.xlu0 %997 }
0x16d1   :  { %1001 = vst.msk [vmem:[#allocation2] sm:$0xc0] %vm1000_vm8, %v998_v12 }
0x16d4   :  { %v1326_v8 = vpop.permute.xlu0 %1325 }
0x16d5   :  { %v3407_v55 = vpop.eup %3406  ;;  %1328 = vst.msk [vmem:[#allocation2 + $0x8] sm:$0x30] %vm888_vm9, %v1326_v8 }
0x16d6   :  { %1431 = vrot.lane.b32.xlu1 %v3407_v55, %s3775_s11 }
0x16da   :  { %885 = vrot.lane.b32.xlu1 %v4122_v34, %s4479_s7  ;;  %v2788_v34 = vld [vmem:[%s4453_s9 + $0x38] sm:$0xff]  ;;  %s3776_s9 = smov 96  }
0x16db   :  { %v3241_v24 = vpack.c.bf16 %v2788_v34, %v2787_v18 }
0x16dd   :  { %3242 = vmatprep.subr.bf16.mxu1 %v3241_v24 }
0x16de   :  { %1214 = vrot.lane.b32.xlu1 %v4164_v36, %s4479_s7  ;;  %3244 = vmatpush3.bf16.msra.mxu1 %v3241_v24 }
0x16df   :  { %3251 = vmatprep.subr.bf16.mxu1 %v3772_v15 }
0x1748   :  { %v1432_v29 = vpop.permute.xlu1 %1431 }
0x1749   :  { %v1434_v30 = vmul.f32 %v3405_v4, %v1432_v29 }
0x174b   :  { %1436 = vrot.lane.b32.xlu1 %v1434_v30, %s4479_s7 }
0x174c   :  { %v886_v31 = vpop.permute.xlu1 %885 }
0x174d   :  { %889 = vst.msk [vmem:[#allocation2] sm:$0x30] %vm888_vm9, %v886_v31 }
0x174f   :  { %1633 = vrot.lane.b32.xlu1 %v1550_v32, %s4479_s7 }
0x1750   :  { %v1215_v33 = vpop.permute.xlu1 %1214 }
0x1751   :  { %1217 = vst.msk [vmem:[#allocation2 + $0x8] sm:$0xc] %vm776_vm7, %v1215_v33 }
0x1754   :  { %v1446_v36 = vld [vmem:[#allocation2] sm:$0xff] }
0x1755   :  { %3057 = vmatprep.mubr.msk.f32.mxu1 %vm473_vm4, %v1446_v36 }
0x17bd   :  { %v1437_v38 = vpop.permute.xlu1 %1436 }
0x17be   :  { %1439 = vst.msk [vmem:[#allocation2 + $0x8] sm:$0xc0] %vm1000_vm8, %v1437_v38  ;;  %1440 = vst.msk [vmem:[#allocation20 - $0x6] sm:$0xc0] %vm1000_vm8, %v1437_v38 }
0x17c1   :  { %v1634_v54 = vpop.permute.xlu1 %1633 }
0x17c5   :  { %v1447_v39 = vld [vmem:[#allocation2 + $0x8] sm:$0xff] }
0x17c6   :  { %3058 = vmatmul.mubr.msk.f32.vlgmr.msra.gmra.mrb[10].mxu1 %vm473_vm4, %v1447_v39 }
0x17c7   :  { %3253 = vmatpush3.bf16.msra.mxu1 %v4208_v25  ;;  %3079 = vmatprep.mubr.msk.f32.mxu1 %vm3773_vm5, %v3774_v21 }
0x17c8   :  { %3254 = vmatprep.subr.bf16.mxu1 %v3772_v15 }
0x17cb   :  { %3256 = vmatpush3.bf16.msra.mxu1 %v4212_v28 }
0x17cc   :  { %3263 = vmatprep.subr.bf16.mxu1 %v3772_v15 }
0x1899   :  { %v3059_v43 = vpop.f32.mrb[10].mxu1 }
0x189a   :  { %v4238_v44 = vadd.f32 %v3059_v43, %v2789_v42  ;;  %v1533_v45 = vpop.f32.mrb[11].mxu1 }
0x189b   :  { %v4240_v46 = vadd.f32 %v2789_v42, %v1533_v45 }
0x189d   :  { %v1624_v47 = vadd.f32 %v1620_v40, %v4240_v46 }
0x189f   :  { %3408 = vtanh.f32 %v1624_v47  ;;  %v2793_v49 = vmul.f32 -1.442695, %v1624_v47 }
0x18a1   :  { %3410 = vpow2.f32 %v2793_v49 }
0x18a9   :  { %v3409_v48 = vpop.eup %3408 }
0x18aa   :  { %1638 = vrot.lane.b32.xlu0 %v3409_v48, %s3775_s11 }
0x18ab   :  { %v3411_v50 = vpop.eup %3410 }
0x18ac   :  { %v1628_v51 = vadd.f32 1.0, %v3411_v50 }
0x18ae   :  { %3412 = vrcp.f32 %v1628_v51 }
0x18b8   :  { %v3413_v52 = vpop.eup %3412 }
0x18b9   :  { %v1636_v56 = vmul.f32 %v3413_v52, %v1634_v54 }
0x191c   :  { %v1639_v53 = vpop.permute.xlu0 %1638 }
0x191d   :  { %v1641_v37 = vmul.f32 %v3413_v52, %v1639_v53 }
0x191f   :  { %1643 = vrot.lane.b32.xlu0 %v1641_v37, %s4479_s7 }
0x1991   :  { %v1644_v57 = vpop.permute.xlu0 %1643 }
0x1992   :  { %v1646_v58 = vadd.f32 %v1644_v57, %v1636_v56 }
0x1994   :  { %3414 = vtanh.f32 %v1646_v58  ;;  %v1742_v11 = vrot.slane %v1646_v58, 6 }
0x199e   :  { %v3415_v59 = vpop.eup %3414 }
0x199f   :  { %1649 = vrot.lane.b32.xlu1 %v3415_v59, %s3775_s11 }
0x1a11   :  { %v1650_v60 = vpop.permute.xlu1 %1649 }
0x1a12   :  { %v1652_v61 = vmul.f32 %v3413_v52, %v1650_v60 }
0x1a14   :  { %1654 = vrot.lane.b32.xlu0 %v1652_v61, %s4479_s7 }
0x1a86   :  { %v1655_v62 = vpop.permute.xlu0 %1654 }
0x1a87   :  { %1657 = vst.msk [vmem:[#allocation2] sm:$0x3] %vm667_vm6, %v1655_v62  ;;  %3080 = vmatmul.mubr.msk.f32.vlgmr.msra.gmra.mrb[12].mxu1 %vm473_vm4, %v1655_v62 }
0x1a88   :  { %3265 = vmatpush3.bf16.msra.mxu1 %v4208_v25  ;;  %3101 = vmatprep.mubr.msk.f32.mxu1 %vm3773_vm5, %v3774_v21 }
0x1a89   :  { %3266 = vmatprep.subr.bf16.mxu1 %v3772_v15 }
0x1a8c   :  { %3268 = vmatpush3.bf16.msra.mxu1 %v4212_v28 }
0x1a8d   :  { %3275 = vmatprep.subr.bf16.mxu1 %v3772_v15 }
0x1b5a   :  { %v1726_v63 = vpop.f32.mrb[12].mxu1 }
0x1b5b   :  { %v1731_v0 = vrot.slane %v1726_v63, 6  ;;  %v3081_v1 = vpop.f32.mrb[13].mxu1 }
0x1b5d   :  { %v1733_v2 = vadd.f32 %v1731_v0, %v4240_v46 }
0x1b5f   :  { %3416 = vtanh.f32 %v1733_v2  ;;  %v2795_v4 = vmul.f32 -1.442695, %v1733_v2 }
0x1b61   :  { %3418 = vpow2.f32 %v2795_v4 }
0x1b69   :  { %v3417_v3 = vpop.eup %3416 }
0x1b6a   :  { %1746 = vrot.lane.b32.xlu1 %v3417_v3, %s3775_s11 }
0x1b6b   :  { %v3419_v5 = vpop.eup %3418 }
0x1b6c   :  { %v1737_v6 = vadd.f32 1.0, %v3419_v5 }
0x1b6e   :  { %3420 = vrcp.f32 %v1737_v6 }
0x1b78   :  { %v3421_v35 = vpop.eup %3420 }
0x1b79   :  { %v1744_v12 = vmul.f32 %v3421_v35, %v1742_v11 }
0x1bdc   :  { %v1747_v7 = vpop.permute.xlu1 %1746 }
0x1bdd   :  { %v1749_v9 = vmul.f32 %v3421_v35, %v1747_v7 }
0x1bdf   :  { %1751 = vrot.lane.b32.xlu0 %v1749_v9, %s4479_s7 }
0x1c51   :  { %v1752_v8 = vpop.permute.xlu0 %1751 }
0x1c52   :  { %v1754_v55 = vadd.f32 %v1752_v8, %v1744_v12 }
0x1c54   :  { %3422 = vtanh.f32 %v1754_v55  ;;  %v1853_v36 = vrot.slane %v1754_v55, 6 }
0x1c5e   :  { %v3423_v13 = vpop.eup %3422 }
0x1c5f   :  { %1757 = vrot.lane.b32.xlu1 %v3423_v13, %s3775_s11 }
0x1cd1   :  { %v1758_v16 = vpop.permute.xlu1 %1757 }
0x1cd2   :  { %v4259_v17 = vmul.f32 %v3421_v35, %v1758_v16 }
0x1cd4   :  { %v1766_v18 = vrot.slane %v4259_v17, 2 }
0x1cd6   :  { %1767 = vrot.lane.b32.xlu0 %v1766_v18, %s4479_s7 }
0x1d48   :  { %v1768_v34 = vpop.permute.xlu0 %1767 }
0x1d49   :  { %3091 = vmatmul.mubr.msk.f32.vlgmr.msra.gmra.mrb[14].mxu0 %vm473_vm4, %v1768_v34 }
0x1d4a   :  { %3271 = vmatpush3.bf16.msra.mxu0 %v4208_v25  ;;  %3112 = vmatprep.mubr.msk.f32.mxu0 %vm3773_vm5, %v3774_v21 }
0x1d4b   :  { %3272 = vmatprep.subr.bf16.mxu0 %v3772_v15 }
0x1d4e   :  { %3274 = vmatpush3.bf16.msra.mxu0 %v4212_v28 }
0x1d4f   :  { %3281 = vmatprep.subr.bf16.mxu0 %v3772_v15 }
0x1e1c   :  { %v1837_v20 = vpop.f32.mrb[14].mxu0 }
0x1e1d   :  { %v1842_v24 = vrot.slane %v1837_v20, 4  ;;  %v3092_v14 = vpop.f32.mrb[15].mxu0 }
0x1e1f   :  { %v1844_v26 = vadd.f32 %v1842_v24, %v4240_v46 }
0x1e21   :  { %3424 = vtanh.f32 %v1844_v26  ;;  %v2797_v19 = vmul.f32 -1.442695, %v1844_v26 }
0x1e23   :  { %3426 = vpow2.f32 %v2797_v19 }
0x1e2b   :  { %v3425_v27 = vpop.eup %3424 }
0x1e2c   :  { %1857 = vrot.lane.b32.xlu1 %v3425_v27, %s3775_s11 }
0x1e2d   :  { %v3427_v29 = vpop.eup %3426 }
0x1e2e   :  { %v1848_v30 = vadd.f32 1.0, %v3427_v29 }
0x1e30   :  { %3428 = vrcp.f32 %v1848_v30 }
0x1e3a   :  { %v3429_v31 = vpop.eup %3428 }
0x1e3b   :  { %v1855_v38 = vmul.f32 %v3429_v31, %v1853_v36 }
0x1e9e   :  { %v1858_v32 = vpop.permute.xlu1 %1857 }
0x1e9f   :  { %v1860_v33 = vmul.f32 %v3429_v31, %v1858_v32 }
0x1ea1   :  { %1862 = vrot.lane.b32.xlu0 %v1860_v33, %s4479_s7 }
0x1f13   :  { %v1863_v39 = vpop.permute.xlu0 %1862 }
0x1f14   :  { %v1865_v40 = vadd.f32 %v1863_v39, %v1855_v38 }
0x1f16   :  { %3430 = vtanh.f32 %v1865_v40  ;;  %v1964_v59 = vrot.slane %v1865_v40, 6 }
0x1f20   :  { %v3431_v41 = vpop.eup %3430 }
0x1f21   :  { %1868 = vrot.lane.b32.xlu1 %v3431_v41, %s3775_s11 }
0x1f93   :  { %v1869_v42 = vpop.permute.xlu1 %1868 }
0x1f94   :  { %v4274_v43 = vmul.f32 %v3429_v31, %v1869_v42 }
0x1f96   :  { %v1877_v45 = vrot.slane %v4274_v43, 4 }
0x1f98   :  { %1878 = vrot.lane.b32.xlu0 %v1877_v45, %s4479_s7 }
0x200a   :  { %v1879_v47 = vpop.permute.xlu0 %1878 }
0x200b   :  { %3102 = vmatmul.mubr.msk.f32.vlgmr.msra.gmra.mrb[14].mxu1 %vm473_vm4, %v1879_v47 }
0x200c   :  { %3277 = vmatpush3.bf16.msra.mxu1 %v4208_v25  ;;  %3123 = vmatprep.mubr.msk.f32.mxu1 %vm3773_vm5, %v3774_v21 }
0x200d   :  { %3278 = vmatprep.subr.bf16.mxu1 %v3772_v15 }
0x2010   :  { %3280 = vmatpush3.bf16.msra.mxu1 %v4212_v28 }
0x2011   :  { %3287 = vmatprep.subr.bf16.mxu1 %v3772_v15 }
0x20de   :  { %v1948_v48 = vpop.f32.mrb[14].mxu1 }
0x20df   :  { %v1953_v49 = vrot.slane %v1948_v48, 2  ;;  %v3103_v50 = vpop.f32.mrb[15].mxu1 }
0x20e1   :  { %v1955_v51 = vadd.f32 %v1953_v49, %v4240_v46 }
0x20e3   :  { %3432 = vtanh.f32 %v1955_v51  ;;  %v2799_v53 = vmul.f32 -1.442695, %v1955_v51 }
0x20e5   :  { %3434 = vpow2.f32 %v2799_v53 }
0x20ed   :  { %v3433_v52 = vpop.eup %3432 }
0x20ee   :  { %1968 = vrot.lane.b32.xlu1 %v3433_v52, %s3775_s11 }
0x20ef   :  { %v3435_v37 = vpop.eup %3434 }
0x20f0   :  { %v1959_v54 = vadd.f32 1.0, %v3435_v37 }
0x20f2   :  { %3436 = vrcp.f32 %v1959_v54 }
0x20fc   :  { %v3437_v56 = vpop.eup %3436 }
0x20fd   :  { %v1966_v60 = vmul.f32 %v3437_v56, %v1964_v59 }
0x2160   :  { %v1969_v57 = vpop.permute.xlu1 %1968 }
0x2161   :  { %v1971_v58 = vmul.f32 %v3437_v56, %v1969_v57 }
0x2163   :  { %1973 = vrot.lane.b32.xlu0 %v1971_v58, %s4479_s7 }
0x21d5   :  { %v1974_v61 = vpop.permute.xlu0 %1973 }
0x21d6   :  { %v1976_v62 = vadd.f32 %v1974_v61, %v1966_v60 }
0x21d8   :  { %3438 = vtanh.f32 %v1976_v62  ;;  %v2072_v55 = vrot.slane %v1976_v62, 6 }
0x21e2   :  { %v3439_v46 = vpop.eup %3438 }
0x21e3   :  { %1979 = vrot.lane.b32.xlu1 %v3439_v46, %s3775_s11 }
0x2255   :  { %v1980_v63 = vpop.permute.xlu1 %1979 }
0x2256   :  { %v4289_v0 = vmul.f32 %v3437_v56, %v1980_v63 }
0x2258   :  { %v1988_v1 = vrot.slane %v4289_v0, 6 }
0x225a   :  { %1989 = vrot.lane.b32.xlu0 %v1988_v1, %s4479_s7 }
0x22cc   :  { %v1990_v2 = vpop.permute.xlu0 %1989 }
0x22cd   :  { %3113 = vmatmul.mubr.msk.f32.vlgmr.msra.gmra.mrb[16].mxu0 %vm473_vm4, %v1990_v2 }
0x22ce   :  { %3283 = vmatpush3.bf16.msra.mxu0 %v4208_v25  ;;  %3134 = vmatprep.mubr.msk.f32.mxu0 %vm3773_vm5, %v3774_v21 }
0x22cf   :  { %3284 = vmatprep.subr.bf16.mxu0 %v3772_v15 }
0x22d2   :  { %3286 = vmatpush3.bf16.msra.mxu0 %v4212_v28 }
0x23a0   :  { %v2059_v3 = vpop.f32.mrb[16].mxu0 }
0x23a1   :  { %v2063_v4 = vadd.f32 %v2059_v3, %v4238_v44  ;;  %v3114_v5 = vpop.f32.mrb[17].mxu0 }
0x23a3   :  { %3440 = vtanh.f32 %v2063_v4  ;;  %v2801_v35 = vmul.f32 -1.442695, %v2063_v4 }
0x23a5   :  { %3442 = vpow2.f32 %v2801_v35 }
0x23ad   :  { %v3441_v6 = vpop.eup %3440 }
0x23ae   :  { %2076 = vrot.lane.b32.xlu1 %v3441_v6, %s3775_s11 }
0x23af   :  { %v3443_v7 = vpop.eup %3442 }
0x23b0   :  { %v2067_v9 = vadd.f32 1.0, %v3443_v7 }
0x23b2   :  { %3444 = vrcp.f32 %v2067_v9 }
0x23bc   :  { %v3445_v11 = vpop.eup %3444 }
0x23bd   :  { %v2074_v13 = vmul.f32 %v3445_v11, %v2072_v55 }
0x2420   :  { %v2077_v12 = vpop.permute.xlu1 %2076 }
0x2421   :  { %v2079_v8 = vmul.f32 %v3445_v11, %v2077_v12 }
0x2423   :  { %2081 = vrot.lane.b32.xlu0 %v2079_v8, %s4479_s7 }
0x2495   :  { %v2082_v16 = vpop.permute.xlu0 %2081 }
0x2496   :  { %v2084_v18 = vadd.f32 %v2082_v16, %v2074_v13 }
0x2498   :  { %3446 = vtanh.f32 %v2084_v18 }
0x24a2   :  { %v3447_v34 = vpop.eup %3446 }
0x24a3   :  { %2087 = vrot.lane.b32.xlu1 %v3447_v34, %s3775_s11 }
0x2515   :  { %v2088_v20 = vpop.permute.xlu1 %2087 }
0x2516   :  { %v2090_v24 = vmul.f32 %v3445_v11, %v2088_v20 }
0x2518   :  { %2092 = vrot.lane.b32.xlu0 %v2090_v24, %s4479_s7 }
0x258a   :  { %v2093_v14 = vpop.permute.xlu0 %2092 }
0x258b   :  { %2095 = vst.msk [vmem:[#allocation2 + $0x8] sm:$0x3] %vm667_vm6, %v2093_v14  ;;  %3124 = vmatmul.mubr.msk.f32.vlgmr.msra.gmra.mrb[16].mxu1 %vm473_vm4, %v2093_v14 }
0x258c   :  { %3289 = vmatpush3.bf16.msra.mxu1 %v4208_v25  ;;  %3145 = vmatprep.mubr.msk.f32.mxu1 %vm3773_vm5, %v3774_v21 }
0x258d   :  { %3290 = vmatprep.subr.bf16.mxu1 %v3772_v15  ;;  %v2180_v15 = vrot.slane %v2084_v18, 6 }
0x2590   :  { %3292 = vmatpush3.bf16.msra.mxu1 %v4212_v28 }
0x265e   :  { %v2164_v26 = vpop.f32.mrb[16].mxu1 }
0x265f   :  { %v2169_v27 = vrot.slane %v2164_v26, 6  ;;  %v3125_v19 = vpop.f32.mrb[17].mxu1  ;;  %v2441_v26 = vld [vmem:[%s4457_s13 + $0x8] sm:$0xff] }
0x2660   :  { %v2442_v19 = vld [vmem:[%s4457_s13 + $0x10] sm:$0xff] }
0x2661   :  { %v2171_v29 = vadd.f32 %v2169_v27, %v4238_v44 }
0x2663   :  { %3448 = vtanh.f32 %v2171_v29  ;;  %v2803_v31 = vmul.f32 -1.442695, %v2171_v29 }
0x2665   :  { %3450 = vpow2.f32 %v2803_v31  ;;  %v2437_v31 = vld [vmem:[%s4456_s12 + $0x8] sm:$0xff] }
0x266d   :  { %v3449_v30 = vpop.eup %3448 }
0x266e   :  { %2184 = vrot.lane.b32.xlu1 %v3449_v30, %s3775_s11  ;;  %v2436_v30 = vld [vmem:[%s4456_s12] sm:$0xff] }
0x266f   :  { %v3451_v32 = vpop.eup %3450 }
0x2670   :  { %v2175_v25 = vadd.f32 1.0, %v3451_v32  ;;  %v3301_v32 = vpack.c.bf16 %v2437_v31, %v2436_v30 }
0x2672   :  { %3452 = vrcp.f32 %v2175_v25 }
0x267c   :  { %v3453_v33 = vpop.eup %3452 }
0x267d   :  { %v2182_v28 = vmul.f32 %v3453_v33, %v2180_v15  ;;  %v2618_v15 = vld [vmem:[%s4459_s15 + $0x8] sm:$0xff] }
0x26e0   :  { %v2185_v21 = vpop.permute.xlu1 %2184 }
0x26e1   :  { %v2187_v36 = vmul.f32 %v3453_v33, %v2185_v21 }
0x26e3   :  { %2189 = vrot.lane.b32.xlu0 %v2187_v36, %s4479_s7  ;;  %v2617_v36 = vld [vmem:[%s4459_s15] sm:$0xff] }
0x2755   :  { %v2190_v38 = vpop.permute.xlu0 %2189 }
0x2756   :  { %v2192_v39 = vadd.f32 %v2190_v38, %v2182_v28  ;;  %v3309_v28 = vpack.c.bf16 %v2618_v15, %v2617_v36 }
0x2758   :  { %3454 = vtanh.f32 %v2192_v39  ;;  %v2291_v59 = vrot.slane %v2192_v39, 6  ;;  %3310 = vmatprep.subr.bf16.mxu1 %v3309_v28 }
0x2762   :  { %v3455_v40 = vpop.eup %3454 }
0x2763   :  { %2195 = vrot.lane.b32.xlu1 %v3455_v40, %s3775_s11 }
0x27d5   :  { %v2196_v41 = vpop.permute.xlu1 %2195 }
0x27d6   :  { %v4315_v42 = vmul.f32 %v3453_v33, %v2196_v41  ;;  %v2755_v41 = vld [vmem:[#allocation9] ss:$0 sm:$0xff] }
0x27d8   :  { %v2204_v45 = vrot.slane %v4315_v42, 2 }
0x27da   :  { %2205 = vrot.lane.b32.xlu0 %v2204_v45, %s4479_s7 }
0x284c   :  { %v2206_v47 = vpop.permute.xlu0 %2205 }
0x284d   :  { %3135 = vmatmul.mubr.msk.f32.vlgmr.msra.gmra.mrb[18].mxu0 %vm473_vm4, %v2206_v47  ;;  %v2438_v47 = vld [vmem:[%s4456_s12 + $0x10] sm:$0xff] }
0x2920   :  { %v2275_v48 = vpop.f32.mrb[18].mxu0 }
0x2921   :  { %v2280_v49 = vrot.slane %v2275_v48, 4  ;;  %v3136_v50 = vpop.f32.mrb[19].mxu0  ;;  %v2439_v48 = vld [vmem:[%s4456_s12 + $0x18] sm:$0xff] }
0x2923   :  { %v2282_v51 = vadd.f32 %v2280_v49, %v4238_v44  ;;  %v3305_v49 = vpack.c.bf16 %v2439_v48, %v2438_v47 }
0x2925   :  { %3456 = vtanh.f32 %v2282_v51  ;;  %v2805_v53 = vmul.f32 -1.442695, %v2282_v51 }
0x2927   :  { %3458 = vpow2.f32 %v2805_v53  ;;  %v2619_v53 = vld [vmem:[%s4459_s15 + $0x10] sm:$0xff] }
0x292f   :  { %v3457_v52 = vpop.eup %3456 }
0x2930   :  { %2295 = vrot.lane.b32.xlu1 %v3457_v52, %s3775_s11 }
0x2931   :  { %v3459_v37 = vpop.eup %3458 }
0x2932   :  { %v2286_v54 = vadd.f32 1.0, %v3459_v37  ;;  %v2620_v37 = vld [vmem:[%s4459_s15 + $0x18] sm:$0xff]  ;;  %s3696_s15 = scalar_lea.vmem %s2721_s27, 64 }
0x2933   :  { %p3697_p10 = scmp.ne.s32.totalorder %s2721_s27, %s3696_s15  ;;  %p3702_p12 = scmp.lt.s32.totalorder %s3696_s15, %s3696_s15 }
0x2934   :  { %3460 = vrcp.f32 %v2286_v54  ;;  %v3313_v54 = vpack.c.bf16 %v2620_v37, %v2619_v53 }
0x2935   :  { %p3703_p13 = por %p3702_p12, %p3701_p11 }
0x2937   :  { %p3704_p0 = pnand %p3703_p13, %p3697_p10 }
0x293e   :  { %v3461_v56 = vpop.eup %3460 }
0x293f   :  { %v2293_v60 = vmul.f32 %v3461_v56, %v2291_v59 }
0x29a2   :  { %v2296_v57 = vpop.permute.xlu1 %2295 }
0x29a3   :  { %v2298_v58 = vmul.f32 %v3461_v56, %v2296_v57 }
0x29a5   :  { %2300 = vrot.lane.b32.xlu0 %v2298_v58, %s4479_s7 }
0x2a17   :  { %v2301_v61 = vpop.permute.xlu0 %2300 }
0x2a18   :  { %v2303_v62 = vadd.f32 %v2301_v61, %v2293_v60 }
0x2a1a   :  { %3462 = vtanh.f32 %v2303_v62 }
0x2a24   :  { %v3463_v46 = vpop.eup %3462 }
0x2a25   :  { %2306 = vrot.lane.b32.xlu1 %v3463_v46, %s3775_s11 }
0x2a97   :  { %v2307_v63 = vpop.permute.xlu1 %2306 }
0x2a98   :  { %v2309_v1 = vmul.f32 %v3461_v56, %v2307_v63  ;;  %v2812_v56 = vld [vmem:[#allocation18] ss:$0 sm:$0xff] }
0x2a9a   :  { %v2315_v2 = vrot.slane %v2309_v1, 4 }
0x2a9c   :  { %2316 = vrot.lane.b32.xlu0 %v2315_v2, %s4479_s7 }
0x2b0e   :  { %v2317_v3 = vpop.permute.xlu0 %2316 }
0x2b0f   :  { %3146 = vmatmul.mubr.msk.f32.vlgmr.msra.gmra.mrb[18].mxu1 %vm473_vm4, %v2317_v3 }
0x2b10   :  { %3312 = vmatpush3.bf16.msra.mxu1 %v3309_v28 }
0x2b11   :  { %3314 = vmatprep.subr.bf16.mxu1 %v3313_v54 }
0x2b14   :  { %3316 = vmatpush3.bf16.msra.mxu1 %v3313_v54 }
0x2be2   :  { %v2386_v4 = vpop.f32.mrb[18].mxu1 }
0x2be3   :  { %v2391_v5 = vrot.slane %v2386_v4, 2  ;;  %v3147_v6 = vpop.f32.mrb[19].mxu1 }
0x2be5   :  { %v2393_v35 = vadd.f32 %v2391_v5, %v4238_v44  ;;  %v2402_v44 = vrot.slane %v2303_v62, 6 }
0x2be7   :  { %3464 = vtanh.f32 %v2393_v35  ;;  %v2807_v9 = vmul.f32 -1.442695, %v2393_v35 }
0x2be9   :  { %3466 = vpow2.f32 %v2807_v9 }
0x2bf1   :  { %v3465_v7 = vpop.eup %3464 }
0x2bf2   :  { %2406 = vrot.lane.b32.xlu1 %v3465_v7, %s3775_s11 }
0x2bf3   :  { %v3467_v11 = vpop.eup %3466 }
0x2bf4   :  { %v2397_v12 = vadd.f32 1.0, %v3467_v11 }
0x2bf6   :  { %3468 = vrcp.f32 %v2397_v12 }
0x2c00   :  { %v3469_v8 = vpop.eup %3468 }
0x2c01   :  { %v2404_v16 = vmul.f32 %v3469_v8, %v2402_v44 }
0x2c64   :  { %v2407_v55 = vpop.permute.xlu1 %2406 }
0x2c65   :  { %v2409_v13 = vmul.f32 %v3469_v8, %v2407_v55 }
0x2c67   :  { %2411 = vrot.lane.b32.xlu0 %v2409_v13, %s4479_s7 }
0x2c6b   :  { %1762 = vrot.lane.b32.xlu0 %v4259_v17, %s4479_s7 }
0x2c6f   :  { %1984 = vrot.lane.b32.xlu0 %v4289_v0, %s4479_s7 }
0x2c73   :  { %2311 = vrot.lane.b32.xlu0 %v2309_v1, %s4479_s7 }
0x2c77   :  { %1442 = vrot.lane.b32.xlu0 %v4185_v10, %s3776_s9  ;;  %v2440_v10 = vld [vmem:[%s4457_s13] sm:$0xff] }
0x2c78   :  { %v3293_v27 = vpack.c.bf16 %v2441_v26, %v2440_v10 }
0x2c7a   :  { %3294 = vmatprep.subr.bf16.mxu0 %v3293_v27 }
0x2c7b   :  { %3296 = vmatpush3.bf16.msra.mxu0 %v3293_v27 }
0x2cd9   :  { %v2412_v18 = vpop.permute.xlu0 %2411 }
0x2cda   :  { %v2414_v34 = vadd.f32 %v2412_v18, %v2404_v16 }
0x2cdc   :  { %3470 = vtanh.f32 %v2414_v34 }
0x2cdd   :  { %v1763_v20 = vpop.permute.xlu0 %1762 }
0x2cde   :  { %1765 = vst.msk [vmem:[#allocation2] sm:$0xc] %vm776_vm7, %v1763_v20 }
0x2ce1   :  { %v1985_v24 = vpop.permute.xlu0 %1984 }
0x2ce2   :  { %1987 = vst.msk [vmem:[#allocation2] sm:$0xc0] %vm1000_vm8, %v1985_v24 }
0x2ce5   :  { %v2312_v17 = vpop.permute.xlu0 %2311 }
0x2ce6   :  { %v3471_v14 = vpop.eup %3470  ;;  %2314 = vst.msk [vmem:[#allocation2 + $0x8] sm:$0x30] %vm888_vm9, %v2312_v17 }
0x2ce7   :  { %2417 = vrot.lane.b32.xlu1 %v3471_v14, %s3775_s11 }
0x2ce9   :  { %v1443_v0 = vpop.permute.xlu0 %1442 }
0x2cea   :  { %1445 = vst.msk [vmem:[#allocation21 - $0x6] sm:$0xc0] %vm1000_vm8, %v1443_v0 }
0x2ceb   :  { %1873 = vrot.lane.b32.xlu1 %v4274_v43, %s4479_s7  ;;  %v2443_v43 = vld [vmem:[%s4457_s13 + $0x18] sm:$0xff] }
0x2cec   :  { %v3297_v29 = vpack.c.bf16 %v2443_v43, %v2442_v19 }
0x2cee   :  { %3298 = vmatprep.subr.bf16.mxu0 %v3297_v29 }
0x2cef   :  { %2200 = vrot.lane.b32.xlu1 %v4315_v42, %s4479_s7  ;;  %3300 = vmatpush3.bf16.msra.mxu0 %v3297_v29  ;;  %v275_v42 = vadd.f32 %v2755_v41, %v4075_v23  ;;  %v280_v23 = vadd.f32 %v4073_v22, %v2755_v41 }
0x2cf0   :  { %3302 = vmatprep.subr.bf16.mxu0 %v3301_v32 }
0x2cf1   :  { %v283_v50 = vmax.f32 %v275_v42, 0.0  ;;  %v284_v52 = vmax.f32 %v280_v23, 0.0 }
0x2d59   :  { %v2418_v25 = vpop.permute.xlu1 %2417 }
0x2d5a   :  { %v2420_v33 = vmul.f32 %v3469_v8, %v2418_v25 }
0x2d5c   :  { %2422 = vrot.lane.b32.xlu1 %v2420_v33, %s4479_s7 }
0x2d5d   :  { %v1874_v21 = vpop.permute.xlu1 %1873 }
0x2d5e   :  { %1876 = vst.msk [vmem:[#allocation2] sm:$0x30] %vm888_vm9, %v1874_v21 }
0x2d60   :  { %2429 = vrot.lane.b32.xlu1 %v2414_v34, %s3776_s9 }
0x2d61   :  { %v2201_v38 = vpop.permute.xlu1 %2200 }
0x2d62   :  { %2203 = vst.msk [vmem:[#allocation2 + $0x8] sm:$0xc] %vm776_vm7, %v2201_v38 }
0x2d65   :  { %v2434_v39 = vld [vmem:[#allocation2] sm:$0xff] }
0x2d66   :  { %3156 = vmatprep.mubr.msk.f32.mxu0 %vm473_vm4, %v2434_v39 }
0x2dce   :  { %v2423_v40 = vpop.permute.xlu1 %2422 }
0x2dcf   :  { %2425 = vst.msk [vmem:[#allocation2 + $0x8] sm:$0xc0] %vm1000_vm8, %v2423_v40  ;;  %2427 = vst.msk [vmem:[#allocation20 - $0x4] sm:$0xc0] %vm1000_vm8, %v2423_v40 }
0x2dd2   :  { %v2430_v45 = vpop.permute.xlu1 %2429 }
0x2dd3   :  { %2433 = vst.msk [vmem:[#allocation21 - $0x4] sm:$0xc0] %vm1000_vm8, %v2430_v45 }
0x2dd6   :  { %v2435_v51 = vld [vmem:[#allocation2 + $0x8] sm:$0xff] }
0x2dd7   :  { %3157 = vmatmul.mubr.msk.f32.vlgmr.msra.gmra.mrb[20].mxu0 %vm473_vm4, %v2435_v51 }
0x2dd8   :  { %3304 = vmatpush3.bf16.msra.mxu0 %v3301_v32  ;;  %3167 = vmatprep.mubr.msk.f32.mxu0 %vm473_vm4, %v283_v50 }
0x2dd9   :  { %3306 = vmatprep.subr.bf16.mxu0 %v3305_v49 }
0x2ddc   :  { %3308 = vmatpush3.bf16.msra.mxu0 %v3305_v49 }
0x2ddf   :  { %3168 = vmatmul.mubr.msk.f32.vlgmr.msra.gmra.mrb[20].mxu0 %vm473_vm4, %v284_v52 }
0x2eb2   :  { %v3169_v57 = vpop.f32.mrb[20].mxu0 }
0x2eb3   :  { %v2614_v58 = vadd.f32 %v3169_v57, %v2812_v56  ;;  %v2597_v22 = vpop.f32.mrb[21].mxu0 }
0x2eb4   :  { %v2613_v59 = vadd.f32 %v2812_v56, %v2597_v22 }
0x2eb5   :  { %v2616_v61 = vmax.f32 %v2614_v58, 0.0 }
0x2eb6   :  { %v2615_v60 = vmax.f32 %v2613_v59, 0.0 }
0x2eb8   :  { %3178 = vmatprep.mubr.msk.f32.mxu1 %vm473_vm4, %v2615_v60 }
0x2eb9   :  { %3179 = vmatmul.mubr.msk.f32.vlgmr.msra.gmra.mrb[20].mxu1 %vm473_vm4, %v2616_v61 }
0x2eba   :  { %3707 = shalt.err (!%p3704_p0)
}
0x2ebb   :  { %s3708_s26 = scalar_lea.hbm %s4462_s18, 64 }
0x2ebc   :  { %p3709_p1 = scmp.ne.s32.totalorder %s4462_s18, %s3708_s26  ;;  %p3712_p2 = scmp.lt.u32.totalorder %s3708_s26, %s4462_s18 }
0x2ebe   :  { %p3714_p3 = pnand %p3712_p2, %p3709_p1 }
0x2ec0   :  { %3717 = shalt.err (!%p3714_p3)
}
0x2ec1   :  { %2726 = dma.vmem_to_hbm [thread:$0]  %s2721_s27, 64, %s4462_s18, [#allocation5], %s4479_s7, %s4479_s7, %s4478_s23  }
0x2ec2   :  { %s3718_s11 = scalar_lea.vmem %s4396_s5, 64  ;;  %p3723_p5 = scmp.lt.s32.totalorder %s4396_s5, %s4396_s5 }
0x2ec3   :  { %p3719_p4 = scmp.ne.s32.totalorder %s4396_s5, %s3718_s11  ;;  %p3724_p6 = scmp.lt.s32.totalorder %s3718_s11, %s3718_s11 }
0x2ec5   :  { %p3725_p7 = por %p3724_p6, %p3723_p5 }
0x2ec7   :  { %p3726_p8 = pnand %p3725_p7, %p3719_p4 }
0x2ec9   :  { %3729 = shalt.err (!%p3726_p8)
}
0x2eca   :  { %s3730_s21 = scalar_lea.hbm %s4463_s19, 64 }
0x2ecb   :  { %p3731_p9 = scmp.ne.s32.totalorder %s4463_s19, %s3730_s21  ;;  %p3734_p10 = scmp.lt.u32.totalorder %s3730_s21, %s4463_s19 }
0x2ecd   :  { %p3736_p11 = pnand %p3734_p10, %p3731_p9 }
0x2ecf   :  { %3739 = shalt.err (!%p3736_p11)
}
0x2ed0   :  { %2738 = dma.vmem_to_hbm [thread:$0]  %s4396_s5, 64, %s4463_s19, [#allocation22], %s4479_s7, %s4479_s7, %s4478_s23  }
0x2ed1   :  { %v2813_v62 = vld [vmem:[%s4460_s16] ss:$0 sm:$0xff] }
0x2f8c   :  { %v3180_v46 = vpop.f32.mrb[20].mxu1 }
0x2f8d   :  { %v2706_v63 = vadd.f32 %v3180_v46, %v2813_v62  ;;  %v2700_v1 = vpop.f32.mrb[21].mxu1 }
0x2f8e   :  { %v2701_v2 = vadd.f32 %v2813_v62, %v2700_v1 }
0x2f8f   :  { %3472 = vtanh.f32 %v2706_v63 }
0x2f90   :  { %3474 = vtanh.f32 %v2701_v2 }
0x2f99   :  { %v3473_v3 = vpop.eup %3472 }
0x2f9a   :  { %v3475_v4 = vpop.eup %3474  ;;  %2712 = vst.msk [vmem:[%s4461_s17 + $0x8] sm:$0xff] %vm287_vm1, %v3473_v3 }
0x2f9b   :  { %2711 = vst.msk [vmem:[%s4461_s17] sm:$0xff] %vm287_vm1, %v3475_v4 }
0x2f9c   :  { %3752 = dma.done.wait [#allocation5], 64  }
0x2f9d   :  { %3753 = vsyncadd [#allocation5], 4294967232 }
0x2f9e   :  { %3754 = dma.done.wait [#allocation22], 64  }
0x2f9f   :  { %3755 = vsyncadd [#allocation22], 4294967232 }
0x2fa0   :  { %2747 = vsyncpa [#allocation4], 1 }
0x2fa1   :  { %2748 = vsyncpa [#allocation7], 1 }
0x2fa2   :  { %2749 = vsyncpa [#allocation10], 1 }
0x2fa3   :  { %2750 = vsyncpa [#allocation13], 1 }
0x2fa4   :  { %2751 = vsyncpa [#allocation16], 1 }
0x2fa5   :  { %2752 = vsyncpa [#allocation19], 1 }
0x2fa6   :  { %2753 = vsyncpa [#allocation5], 1 }
0x2fa7   :  { %2754 = vsyncpa [#allocation22], 1 }

</bundles_post_ra>
